<compile_context>
chip_gen: v7x
topology: tpu7x:2x2x1
jax: 0.10.0
libtpu: 0.0.40
codegen_flags: <defaults>
</compile_context>

<pallas_src>
import functools

import numpy as np
import jax
import jax.numpy as jnp
from jax.experimental import pallas as pl
from jax.experimental.pallas import tpu as pltpu

# ----------------------------------------------------------------------------
# Synthetic SMPL-H dimensions (small but structurally faithful)
# ----------------------------------------------------------------------------
B = 2
NUM_BETAS = 10
NUM_BODY_JOINTS = 21
NUM_HAND_JOINTS = 15
NUM_JOINTS = 1 + NUM_BODY_JOINTS + 2 * NUM_HAND_JOINTS   # 52
POSE_FEAT = (NUM_JOINTS - 1) * 9                          # 459
V = 512                                                   # synthetic vertex count
INPUT_SIZE = 76

# SMPL-H kinematic tree (52 joints).
PARENTS = [-1, 0, 0, 0, 1, 2, 3, 4, 5, 6, 7, 8, 9, 9, 9, 12, 13, 14, 16, 17,
           18, 19,
           20, 22, 23, 20, 25, 26, 20, 28, 29, 20, 31, 32, 20, 34, 35,
           21, 37, 38, 21, 40, 41, 21, 43, 44, 21, 46, 47, 21, 49, 50]

# `hand_joint_indexes` is an undefined module-level global in the original
# repo -> define a deterministic 20-element subset of the 45 hand-pose dims.
HAND_JOINT_INDEXES = np.array(
    [2, 5, 8, 11, 14, 17, 20, 23, 26, 29, 32, 35, 38, 41, 44,
     1, 10, 19, 28, 37], dtype=np.int32)

# Deterministic vertex ids used as synthetic "fingertip" extra joints
# (stand-in for smplx VertexJointSelector).
EXTRA_JOINT_VIDS = np.array([7, 31, 63, 95, 127, 191, 255, 319, 383, 447],
                            dtype=np.int32)


# ----------------------------------------------------------------------------
# Fused Pallas kernel: pose blend shapes + linear blend skinning
# ----------------------------------------------------------------------------
def _lbs_fused_kernel(pf_ref, pd_ref, base_ref, a_ref, w_ref, out_ref):
    """Fused pose-blend-shape + LBS over one vertex tile (lane axis = vertices).

    pf_ref   : (B, P)       bf16  pose features (rot_mats[:,1:] - I, flat)
    pd_ref   : (3, P, TV)   bf16  pose blend-shape dirs, coordinate-major
    base_ref : (3, B, TV)   f32   rest vertices (template [+ shape offset])
    a_ref    : (12, B, J)   f32   relative joint transforms, row = 4*k + l
    w_ref    : (J, TV)      f32   skinning weights (transposed)
    out_ref  : (3, B, TV)   f32   skinned vertices, coordinate-major
    """
    pf = pf_ref[...]
    w = w_ref[...]

    # Pose blend shapes: one (B, TV) lane-dense slab per coordinate (MXU,
    # bf16 operands, f32 accumulation).
    vposed = [base_ref[c] + jnp.dot(pf, pd_ref[c],
                                    preferred_element_type=jnp.float32)
              for c in range(3)]

    # Linear blend skinning:
    #   out[k, b, v] = sum_l T[k,l,b,v] * vposed[l,b,v] + T[k,3,b,v]
    # with T[k,l] = A[:, :, k, l] @ w.  Three full-tile FMAs + one add per
    # output coordinate, and a single lane-dense store per coordinate.
    for k in range(3):
        acc = jnp.dot(a_ref[4 * k + 3], w, preferred_element_type=jnp.float32)
        for l in range(3):
            acc = acc + vposed[l] * jnp.dot(
                a_ref[4 * k + l], w, preferred_element_type=jnp.float32)
        out_ref[k] = acc


def lbs_fused_pallas(pose_feat_bf16, posedirs_cm, base, a_t, w_t, *, tv=256):
    batch, p_feat = pose_feat_bf16.shape
    n_j, n_v = w_t.shape
    assert n_v % tv == 0
    grid = (n_v // tv,)
    return pl.pallas_call(
        _lbs_fused_kernel,
        out_shape=jax.ShapeDtypeStruct((3, batch, n_v), jnp.float32),
        grid=grid,
        in_specs=[
            pl.BlockSpec((batch, p_feat), lambda i: (0, 0)),
            pl.BlockSpec((3, p_feat, tv), lambda i: (0, 0, i)),
            pl.BlockSpec((3, batch, tv), lambda i: (0, 0, i)),
            pl.BlockSpec((12, batch, n_j), lambda i: (0, 0, 0)),
            pl.BlockSpec((n_j, tv), lambda i: (0, i)),
        ],
        out_specs=pl.BlockSpec((3, batch, tv), lambda i: (0, 0, i)),
        compiler_params=pltpu.CompilerParams(
            dimension_semantics=("parallel",)),
    )(pose_feat_bf16, posedirs_cm, base, a_t, w_t)


# ----------------------------------------------------------------------------
# Plain-JAX glue: synthetic model params, Rodrigues, level-batched chain
# ----------------------------------------------------------------------------
def make_synthetic_smplh_params(key):
    k1, k2, k3, k4, k5 = jax.random.split(key, 5)
    v_template = 0.2 * jax.random.normal(k1, (V, 3), jnp.float32)
    shapedirs = 0.01 * jax.random.normal(k2, (NUM_BETAS, V, 3), jnp.float32)
    posedirs = 0.01 * jax.random.normal(k3, (POSE_FEAT, V, 3), jnp.float32)
    j_regressor = jax.nn.softmax(
        jax.random.normal(k4, (NUM_JOINTS, V), jnp.float32), axis=-1)
    lbs_weights = jax.nn.softmax(
        4.0 * jax.random.normal(k5, (V, NUM_JOINTS), jnp.float32), axis=-1)

    return {
        # original-layout f32 params (used by the pure-JAX reference path)
        'v_template': v_template,                                   # (V, 3)
        'shapedirs': shapedirs,                                     # (NB, V, 3)
        'posedirs': posedirs,                                       # (P, V, 3)
        'j_regressor': j_regressor,                                 # (J, V)
        'lbs_weights': lbs_weights,                                 # (V, J)
        # Pallas-path constants, pre-permuted / folded at init
        'v_template_cm': v_template.T,                              # (3, V)
        'shapedirs_cm': jnp.transpose(shapedirs, (2, 0, 1)),        # (3, NB, V)
        'posedirs_cm_bf16': jnp.transpose(
            posedirs, (2, 0, 1)).astype(jnp.bfloat16),              # (3, P, V)
        'lbs_weights_t': lbs_weights.T,                             # (J, V)
        'j_template': j_regressor @ v_template,                     # (J, 3)
        'jdirs': jnp.einsum('jv,nvc->njc', j_regressor, shapedirs), # (NB, J, 3)
        'extra_joint_vids': jnp.asarray(EXTRA_JOINT_VIDS),
    }


def batch_rodrigues(rot_vecs, eps=1e-8):
    # rot_vecs: (N, 3) axis-angle -> (N, 3, 3) rotation matrices
    angle = jnp.sqrt(jnp.sum((rot_vecs + eps) ** 2, axis=1, keepdims=True))
    rot_dir = rot_vecs / angle
    cos = jnp.cos(angle)[:, :, None]
    sin = jnp.sin(angle)[:, :, None]
    rx, ry, rz = rot_dir[:, 0], rot_dir[:, 1], rot_dir[:, 2]
    zeros = jnp.zeros_like(rx)
    K = jnp.stack([zeros, -rz, ry, rz, zeros, -rx, -ry, rx, zeros],
                  axis=1).reshape(-1, 3, 3)
    ident = jnp.eye(3, dtype=rot_vecs.dtype)[None]
    return ident + sin * K + (1.0 - cos) * jnp.matmul(K, K)


def _build_levels(parents):
    depth = [0] * len(parents)
    for i in range(1, len(parents)):
        depth[i] = depth[parents[i]] + 1
    levels = []
    for d in range(1, max(depth) + 1):
        idx = [i for i in range(len(parents)) if depth[i] == d]
        levels.append((np.asarray(idx, np.int32),
                       np.asarray([parents[i] for i in idx], np.int32)))
    return levels


_LEVELS = _build_levels(PARENTS)   # ~10 depth levels for SMPL-H


def batch_rigid_transform(rot_mats, joints, parents):
    # rot_mats: (B, J, 3, 3), joints: (B, J, 3)
    # Depth-level batching: one batched (B, n_level, 4, 4) matmul per tree
    # level instead of 51 serial (B, 4, 4) matmuls.
    parents_arr = np.asarray(parents)
    rel_joints = joints.at[:, 1:].add(-joints[:, parents_arr[1:]])
    tf = jnp.concatenate([rot_mats, rel_joints[..., None]], axis=-1)  # (B,J,3,4)
    bottom = jnp.broadcast_to(
        jnp.array([0., 0., 0., 1.], jnp.float32),
        (tf.shape[0], tf.shape[1], 1, 4))
    tf = jnp.concatenate([tf, bottom], axis=2)                        # (B,J,4,4)

    glob = tf                      # root entry already correct
    for idx, pidx in _LEVELS:      # parents of level d live at level d-1
        glob = glob.at[:, idx].set(jnp.matmul(glob[:, pidx], tf[:, idx]))

    posed_joints = glob[:, :, :3, 3]
    corr = jnp.matmul(glob[:, :, :3, :3], joints[..., None])[..., 0]
    a_rel = glob.at[:, :, :3, 3].add(-corr)
    return posed_joints, a_rel


# ----------------------------------------------------------------------------
# Forward pass (matches SMPLH_Reprojection.forward semantics)
# ----------------------------------------------------------------------------
def smplh_reprojection_forward(params, inp, return_verts=False,
                               learn_betas=False, fixed=False,
                               use_pallas=True):
    batch = inp.shape[0]

    # --- parameter scatter (same indexing as the PyTorch module) ---
    if learn_betas:
        if inp.shape[1] < 86:
            raise ValueError("learn_betas=True requires an (B, >=86) input "
                             "(input_size = 76 + 10).")
        betas = inp[:, 76:86]
    else:
        betas = jnp.zeros((batch, NUM_BETAS), jnp.float32)
    body_pose = jnp.zeros((batch, NUM_BODY_JOINTS * 3), jnp.float32)
    body_pose = body_pose.at[:, 33:].set(inp[:, 3:33])
    body_pose = body_pose.at[:, 24:27].set(inp[:, 33:36])
    right_hand = jnp.zeros((batch, NUM_HAND_JOINTS * 3), jnp.float32)
    right_hand = right_hand.at[:, HAND_JOINT_INDEXES].set(inp[:, 36:56])
    left_hand = jnp.zeros((batch, NUM_HAND_JOINTS * 3), jnp.float32)
    left_hand = left_hand.at[:, HAND_JOINT_INDEXES].set(inp[:, 56:76])
    global_orient = jnp.zeros((batch, 3), jnp.float32)
    if fixed:
        transl = jnp.tile(jnp.array([-0.5415, 0.2051, -0.8414], jnp.float32),
                          (batch, 1))
    else:
        transl = jnp.zeros((batch, 3), jnp.float32)
        transl = transl.at[:, :2].set(inp[:, :2])
        transl = transl.at[:, 2].set(-jnp.abs(inp[:, 2]))

    # TODO(synk): smplx hand-PCA projection and hand pose-mean addition are
    # omitted; the synthetic model consumes full 45-dim axis-angle hand poses.
    full_pose = jnp.concatenate(
        [global_orient, body_pose, left_hand, right_hand], axis=1)  # (B, 156)
    rot_mats = batch_rodrigues(full_pose.reshape(-1, 3)).reshape(
        batch, NUM_JOINTS, 3, 3)
    ident = jnp.eye(3, dtype=jnp.float32)
    pose_feat = (rot_mats[:, 1:] - ident).reshape(batch, POSE_FEAT)

    if use_pallas:
        # Rest joints via folded regressor constants (no vertex-space matmul,
        # no dependence on the Pallas kernel output).
        j_rest = params['j_template'][None]
        if learn_betas:
            j_rest = j_rest + jnp.einsum('bn,njc->bjc', betas, params['jdirs'])
        else:
            j_rest = jnp.broadcast_to(j_rest, (batch, NUM_JOINTS, 3))
        posed_joints, a_rel = batch_rigid_transform(rot_mats, j_rest, PARENTS)

        # Rest-vertex base, coordinate-major (3, B, V); shapedirs matmul is
        # skipped entirely on the default learn_betas=False path.
        if learn_betas:
            base = params['v_template_cm'][:, None, :] + jnp.einsum(
                'bn,cnv->cbv', betas, params['shapedirs_cm'])
        else:
            base = jnp.broadcast_to(params['v_template_cm'][:, None, :],
                                    (3, batch, V))

        # Relative transforms reorganised to (12, B, J), row = 4*k + l.
        a_t = jnp.transpose(a_rel[:, :, :3, :], (2, 3, 0, 1)).reshape(
            12, batch, NUM_JOINTS)

        verts_cm = lbs_fused_pallas(
            pose_feat.astype(jnp.bfloat16), params['posedirs_cm_bf16'],
            base, a_t, params['lbs_weights_t'])
        vertices = jnp.transpose(verts_cm, (1, 2, 0))          # (B, V, 3)
    else:
        # pure-JAX reference (original smplx-style math, f32 everywhere)
        v_shaped = params['v_template'][None] + jnp.einsum(
            'bn,nvc->bvc', betas, params['shapedirs'])
        v_posed = v_shaped + jnp.einsum(
            'bp,pvc->bvc', pose_feat, params['posedirs'])
        j_rest = jnp.einsum('jv,bvc->bjc', params['j_regressor'], v_shaped)
        posed_joints, a_rel = batch_rigid_transform(rot_mats, j_rest, PARENTS)
        t_mat = jnp.einsum('vj,bjkl->bvkl', params['lbs_weights'], a_rel)
        homo = jnp.concatenate(
            [v_posed, jnp.ones((batch, V, 1), jnp.float32)], axis=-1)
        vertices = jnp.einsum('bvkl,bvl->bvk', t_mat[:, :, :3, :], homo)

    # extra "tip" joints from deterministic vertex ids, then apply translation
    extra = vertices[:, params['extra_joint_vids'], :]
    joints = jnp.concatenate([posed_joints, extra], axis=1) + transl[:, None, :]
    vertices = vertices + transl[:, None, :]

    out = {'joints': joints, 'full_pose': full_pose, 'betas': betas,
           'transl': transl}
    if return_verts:
        out['vertices'] = vertices
    return out


# ----------------------------------------------------------------------------
if __name__ == "__main__":
    key = jax.random.PRNGKey(0)
    pkey, ikey = jax.random.split(key, 2)
    params = make_synthetic_smplh_params(pkey)
    inp = jax.random.normal(ikey, (B, INPUT_SIZE), jnp.float32)

    fwd = jax.jit(functools.partial(
        smplh_reprojection_forward, return_verts=True, use_pallas=True))
    out = fwd(params, inp)
    jax.block_until_ready(out)

    # pure-JAX reference for correctness (f32 weights, unfolded regressor)
    ref = smplh_reprojection_forward(params, inp, return_verts=True,
                                     use_pallas=False)
    np.testing.assert_allclose(np.asarray(out['joints']),
                               np.asarray(ref['joints']),
                               rtol=1e-2, atol=1e-2)
    np.testing.assert_allclose(np.asarray(out['vertices']),
                               np.asarray(ref['vertices']),
                               rtol=1e-2, atol=1e-2)
    print("KERNEL_OK")
</pallas_src>

<mosaic_0001>
module attributes {stable_mosaic.version = 11 : i64} {
  func.func @_lbs_fused_kernel(%arg0: i32, %arg1: memref<2x459xbf16, #tpu.memory_space<vmem>>, %arg2: memref<3x459x256xbf16, #tpu.memory_space<vmem>>, %arg3: memref<3x2x256xf32, #tpu.memory_space<vmem>>, %arg4: memref<12x2x52xf32, #tpu.memory_space<vmem>>, %arg5: memref<52x256xf32, #tpu.memory_space<vmem>>, %arg6: memref<3x2x256xf32, #tpu.memory_space<vmem>>) attributes {dimension_semantics = [#tpu.dimension_semantics<parallel>], iteration_bounds = array<i64: 2>, scalar_prefetch = 0 : i64, scratch_operands = 0 : i64, tpu.core_type = #tpu.core_type<tc>, window_params = [{pipeline_mode = #tpu.pipeline_mode<synchronous>, transform_indices = @transform_0, window_bounds = array<i64: 2, 459>}, {transform_indices = @transform_1, window_bounds = array<i64: 3, 459, 256>}, {transform_indices = @transform_2, window_bounds = array<i64: 3, 2, 256>}, {pipeline_mode = #tpu.pipeline_mode<synchronous>, transform_indices = @transform_3, window_bounds = array<i64: 12, 2, 52>}, {transform_indices = @transform_4, window_bounds = array<i64: 52, 256>}, {transform_indices = @transform_5, window_bounds = array<i64: 3, 2, 256>}]} {
    %c0 = arith.constant 0 : index
    %c0_0 = arith.constant 0 : index
    %0 = vector.load %arg1[%c0, %c0_0] : memref<2x459xbf16, #tpu.memory_space<vmem>>, vector<2x459xbf16>
    %c0_1 = arith.constant 0 : index
    %c0_2 = arith.constant 0 : index
    %1 = vector.load %arg5[%c0_1, %c0_2] : memref<52x256xf32, #tpu.memory_space<vmem>>, vector<52x256xf32>
    %c0_3 = arith.constant 0 : index
    %c0_4 = arith.constant 0 : index
    %c0_5 = arith.constant 0 : index
    %2 = vector.load %arg3[%c0_3, %c0_4, %c0_5] : memref<3x2x256xf32, #tpu.memory_space<vmem>>, vector<1x2x256xf32>
    %3 = vector.shape_cast %2 : vector<1x2x256xf32> to vector<2x256xf32>
    %c0_6 = arith.constant 0 : index
    %c0_7 = arith.constant 0 : index
    %c0_8 = arith.constant 0 : index
    %4 = vector.load %arg2[%c0_6, %c0_7, %c0_8] : memref<3x459x256xbf16, #tpu.memory_space<vmem>>, vector<1x459x256xbf16>
    %5 = vector.shape_cast %4 : vector<1x459x256xbf16> to vector<459x256xbf16>
    %cst = arith.constant dense<0.000000e+00> : vector<2x256xf32>
    %6 = tpu.matmul %0, %5, %cst {dimension_numbers = #tpu.dot_dimension_numbers<[1], [0], [0], [1], [0, 0, 1, 1], [], []>} : vector<2x459xbf16>, vector<459x256xbf16>, vector<2x256xf32> -> vector<2x256xf32>
    %7 = arith.addf %3, %6 : vector<2x256xf32>
    %c1 = arith.constant 1 : index
    %c0_9 = arith.constant 0 : index
    %c0_10 = arith.constant 0 : index
    %8 = vector.load %arg3[%c1, %c0_9, %c0_10] : memref<3x2x256xf32, #tpu.memory_space<vmem>>, vector<1x2x256xf32>
    %9 = vector.shape_cast %8 : vector<1x2x256xf32> to vector<2x256xf32>
    %c1_11 = arith.constant 1 : index
    %c0_12 = arith.constant 0 : index
    %c0_13 = arith.constant 0 : index
    %10 = vector.load %arg2[%c1_11, %c0_12, %c0_13] : memref<3x459x256xbf16, #tpu.memory_space<vmem>>, vector<1x459x256xbf16>
    %11 = vector.shape_cast %10 : vector<1x459x256xbf16> to vector<459x256xbf16>
    %cst_14 = arith.constant dense<0.000000e+00> : vector<2x256xf32>
    %12 = tpu.matmul %0, %11, %cst_14 {dimension_numbers = #tpu.dot_dimension_numbers<[1], [0], [0], [1], [0, 0, 1, 1], [], []>} : vector<2x459xbf16>, vector<459x256xbf16>, vector<2x256xf32> -> vector<2x256xf32>
    %13 = arith.addf %9, %12 : vector<2x256xf32>
    %c2 = arith.constant 2 : index
    %c0_15 = arith.constant 0 : index
    %c0_16 = arith.constant 0 : index
    %14 = vector.load %arg3[%c2, %c0_15, %c0_16] : memref<3x2x256xf32, #tpu.memory_space<vmem>>, vector<1x2x256xf32>
    %15 = vector.shape_cast %14 : vector<1x2x256xf32> to vector<2x256xf32>
    %c2_17 = arith.constant 2 : index
    %c0_18 = arith.constant 0 : index
    %c0_19 = arith.constant 0 : index
    %16 = vector.load %arg2[%c2_17, %c0_18, %c0_19] : memref<3x459x256xbf16, #tpu.memory_space<vmem>>, vector<1x459x256xbf16>
    %17 = vector.shape_cast %16 : vector<1x459x256xbf16> to vector<459x256xbf16>
    %cst_20 = arith.constant dense<0.000000e+00> : vector<2x256xf32>
    %18 = tpu.matmul %0, %17, %cst_20 {dimension_numbers = #tpu.dot_dimension_numbers<[1], [0], [0], [1], [0, 0, 1, 1], [], []>} : vector<2x459xbf16>, vector<459x256xbf16>, vector<2x256xf32> -> vector<2x256xf32>
    %19 = arith.addf %15, %18 : vector<2x256xf32>
    %c3 = arith.constant 3 : index
    %c0_21 = arith.constant 0 : index
    %c0_22 = arith.constant 0 : index
    %20 = vector.load %arg4[%c3, %c0_21, %c0_22] : memref<12x2x52xf32, #tpu.memory_space<vmem>>, vector<1x2x52xf32>
    %21 = vector.shape_cast %20 : vector<1x2x52xf32> to vector<2x52xf32>
    %cst_23 = arith.constant dense<0.000000e+00> : vector<2x256xf32>
    %22 = tpu.matmul %21, %1, %cst_23 {dimension_numbers = #tpu.dot_dimension_numbers<[1], [0], [0], [1], [0, 0, 1, 1], [], []>} : vector<2x52xf32>, vector<52x256xf32>, vector<2x256xf32> -> vector<2x256xf32>
    %c0_24 = arith.constant 0 : index
    %c0_25 = arith.constant 0 : index
    %c0_26 = arith.constant 0 : index
    %23 = vector.load %arg4[%c0_24, %c0_25, %c0_26] : memref<12x2x52xf32, #tpu.memory_space<vmem>>, vector<1x2x52xf32>
    %24 = vector.shape_cast %23 : vector<1x2x52xf32> to vector<2x52xf32>
    %cst_27 = arith.constant dense<0.000000e+00> : vector<2x256xf32>
    %25 = tpu.matmul %24, %1, %cst_27 {dimension_numbers = #tpu.dot_dimension_numbers<[1], [0], [0], [1], [0, 0, 1, 1], [], []>} : vector<2x52xf32>, vector<52x256xf32>, vector<2x256xf32> -> vector<2x256xf32>
    %26 = arith.mulf %7, %25 : vector<2x256xf32>
    %27 = arith.addf %22, %26 : vector<2x256xf32>
    %c1_28 = arith.constant 1 : index
    %c0_29 = arith.constant 0 : index
    %c0_30 = arith.constant 0 : index
    %28 = vector.load %arg4[%c1_28, %c0_29, %c0_30] : memref<12x2x52xf32, #tpu.memory_space<vmem>>, vector<1x2x52xf32>
    %29 = vector.shape_cast %28 : vector<1x2x52xf32> to vector<2x52xf32>
    %cst_31 = arith.constant dense<0.000000e+00> : vector<2x256xf32>
    %30 = tpu.matmul %29, %1, %cst_31 {dimension_numbers = #tpu.dot_dimension_numbers<[1], [0], [0], [1], [0, 0, 1, 1], [], []>} : vector<2x52xf32>, vector<52x256xf32>, vector<2x256xf32> -> vector<2x256xf32>
    %31 = arith.mulf %13, %30 : vector<2x256xf32>
    %32 = arith.addf %27, %31 : vector<2x256xf32>
    %c2_32 = arith.constant 2 : index
    %c0_33 = arith.constant 0 : index
    %c0_34 = arith.constant 0 : index
    %33 = vector.load %arg4[%c2_32, %c0_33, %c0_34] : memref<12x2x52xf32, #tpu.memory_space<vmem>>, vector<1x2x52xf32>
    %34 = vector.shape_cast %33 : vector<1x2x52xf32> to vector<2x52xf32>
    %cst_35 = arith.constant dense<0.000000e+00> : vector<2x256xf32>
    %35 = tpu.matmul %34, %1, %cst_35 {dimension_numbers = #tpu.dot_dimension_numbers<[1], [0], [0], [1], [0, 0, 1, 1], [], []>} : vector<2x52xf32>, vector<52x256xf32>, vector<2x256xf32> -> vector<2x256xf32>
    %36 = arith.mulf %19, %35 : vector<2x256xf32>
    %37 = arith.addf %32, %36 : vector<2x256xf32>
    %c0_36 = arith.constant 0 : index
    %c0_37 = arith.constant 0 : index
    %c0_38 = arith.constant 0 : index
    %38 = vector.load %arg6[%c0_36, %c0_37, %c0_38] : memref<3x2x256xf32, #tpu.memory_space<vmem>>, vector<1x2x256xf32>
    %39 = vector.shape_cast %38 : vector<1x2x256xf32> to vector<2x256xf32>
    %40 = vector.shape_cast %37 : vector<2x256xf32> to vector<1x2x256xf32>
    tpu.vector_store %arg6[%c0_36, %c0_37, %c0_38], %40 {strides = array<i32>} : memref<3x2x256xf32, #tpu.memory_space<vmem>>, vector<1x2x256xf32>,
    %c7 = arith.constant 7 : index
    %c0_39 = arith.constant 0 : index
    %c0_40 = arith.constant 0 : index
    %41 = vector.load %arg4[%c7, %c0_39, %c0_40] : memref<12x2x52xf32, #tpu.memory_space<vmem>>, vector<1x2x52xf32>
    %42 = vector.shape_cast %41 : vector<1x2x52xf32> to vector<2x52xf32>
    %cst_41 = arith.constant dense<0.000000e+00> : vector<2x256xf32>
    %43 = tpu.matmul %42, %1, %cst_41 {dimension_numbers = #tpu.dot_dimension_numbers<[1], [0], [0], [1], [0, 0, 1, 1], [], []>} : vector<2x52xf32>, vector<52x256xf32>, vector<2x256xf32> -> vector<2x256xf32>
    %c4 = arith.constant 4 : index
    %c0_42 = arith.constant 0 : index
    %c0_43 = arith.constant 0 : index
    %44 = vector.load %arg4[%c4, %c0_42, %c0_43] : memref<12x2x52xf32, #tpu.memory_space<vmem>>, vector<1x2x52xf32>
    %45 = vector.shape_cast %44 : vector<1x2x52xf32> to vector<2x52xf32>
    %cst_44 = arith.constant dense<0.000000e+00> : vector<2x256xf32>
    %46 = tpu.matmul %45, %1, %cst_44 {dimension_numbers = #tpu.dot_dimension_numbers<[1], [0], [0], [1], [0, 0, 1, 1], [], []>} : vector<2x52xf32>, vector<52x256xf32>, vector<2x256xf32> -> vector<2x256xf32>
    %47 = arith.mulf %7, %46 : vector<2x256xf32>
    %48 = arith.addf %43, %47 : vector<2x256xf32>
    %c5 = arith.constant 5 : index
    %c0_45 = arith.constant 0 : index
    %c0_46 = arith.constant 0 : index
    %49 = vector.load %arg4[%c5, %c0_45, %c0_46] : memref<12x2x52xf32, #tpu.memory_space<vmem>>, vector<1x2x52xf32>
    %50 = vector.shape_cast %49 : vector<1x2x52xf32> to vector<2x52xf32>
    %cst_47 = arith.constant dense<0.000000e+00> : vector<2x256xf32>
    %51 = tpu.matmul %50, %1, %cst_47 {dimension_numbers = #tpu.dot_dimension_numbers<[1], [0], [0], [1], [0, 0, 1, 1], [], []>} : vector<2x52xf32>, vector<52x256xf32>, vector<2x256xf32> -> vector<2x256xf32>
    %52 = arith.mulf %13, %51 : vector<2x256xf32>
    %53 = arith.addf %48, %52 : vector<2x256xf32>
    %c6 = arith.constant 6 : index
    %c0_48 = arith.constant 0 : index
    %c0_49 = arith.constant 0 : index
    %54 = vector.load %arg4[%c6, %c0_48, %c0_49] : memref<12x2x52xf32, #tpu.memory_space<vmem>>, vector<1x2x52xf32>
    %55 = vector.shape_cast %54 : vector<1x2x52xf32> to vector<2x52xf32>
    %cst_50 = arith.constant dense<0.000000e+00> : vector<2x256xf32>
    %56 = tpu.matmul %55, %1, %cst_50 {dimension_numbers = #tpu.dot_dimension_numbers<[1], [0], [0], [1], [0, 0, 1, 1], [], []>} : vector<2x52xf32>, vector<52x256xf32>, vector<2x256xf32> -> vector<2x256xf32>
    %57 = arith.mulf %19, %56 : vector<2x256xf32>
    %58 = arith.addf %53, %57 : vector<2x256xf32>
    %c1_51 = arith.constant 1 : index
    %c0_52 = arith.constant 0 : index
    %c0_53 = arith.constant 0 : index
    %59 = vector.load %arg6[%c1_51, %c0_52, %c0_53] : memref<3x2x256xf32, #tpu.memory_space<vmem>>, vector<1x2x256xf32>
    %60 = vector.shape_cast %59 : vector<1x2x256xf32> to vector<2x256xf32>
    %61 = vector.shape_cast %58 : vector<2x256xf32> to vector<1x2x256xf32>
    tpu.vector_store %arg6[%c1_51, %c0_52, %c0_53], %61 {strides = array<i32>} : memref<3x2x256xf32, #tpu.memory_space<vmem>>, vector<1x2x256xf32>,
    %c11 = arith.constant 11 : index
    %c0_54 = arith.constant 0 : index
    %c0_55 = arith.constant 0 : index
    %62 = vector.load %arg4[%c11, %c0_54, %c0_55] : memref<12x2x52xf32, #tpu.memory_space<vmem>>, vector<1x2x52xf32>
    %63 = vector.shape_cast %62 : vector<1x2x52xf32> to vector<2x52xf32>
    %cst_56 = arith.constant dense<0.000000e+00> : vector<2x256xf32>
    %64 = tpu.matmul %63, %1, %cst_56 {dimension_numbers = #tpu.dot_dimension_numbers<[1], [0], [0], [1], [0, 0, 1, 1], [], []>} : vector<2x52xf32>, vector<52x256xf32>, vector<2x256xf32> -> vector<2x256xf32>
    %c8 = arith.constant 8 : index
    %c0_57 = arith.constant 0 : index
    %c0_58 = arith.constant 0 : index
    %65 = vector.load %arg4[%c8, %c0_57, %c0_58] : memref<12x2x52xf32, #tpu.memory_space<vmem>>, vector<1x2x52xf32>
    %66 = vector.shape_cast %65 : vector<1x2x52xf32> to vector<2x52xf32>
    %cst_59 = arith.constant dense<0.000000e+00> : vector<2x256xf32>
    %67 = tpu.matmul %66, %1, %cst_59 {dimension_numbers = #tpu.dot_dimension_numbers<[1], [0], [0], [1], [0, 0, 1, 1], [], []>} : vector<2x52xf32>, vector<52x256xf32>, vector<2x256xf32> -> vector<2x256xf32>
    %68 = arith.mulf %7, %67 : vector<2x256xf32>
    %69 = arith.addf %64, %68 : vector<2x256xf32>
    %c9 = arith.constant 9 : index
    %c0_60 = arith.constant 0 : index
    %c0_61 = arith.constant 0 : index
    %70 = vector.load %arg4[%c9, %c0_60, %c0_61] : memref<12x2x52xf32, #tpu.memory_space<vmem>>, vector<1x2x52xf32>
    %71 = vector.shape_cast %70 : vector<1x2x52xf32> to vector<2x52xf32>
    %cst_62 = arith.constant dense<0.000000e+00> : vector<2x256xf32>
    %72 = tpu.matmul %71, %1, %cst_62 {dimension_numbers = #tpu.dot_dimension_numbers<[1], [0], [0], [1], [0, 0, 1, 1], [], []>} : vector<2x52xf32>, vector<52x256xf32>, vector<2x256xf32> -> vector<2x256xf32>
    %73 = arith.mulf %13, %72 : vector<2x256xf32>
    %74 = arith.addf %69, %73 : vector<2x256xf32>
    %c10 = arith.constant 10 : index
    %c0_63 = arith.constant 0 : index
    %c0_64 = arith.constant 0 : index
    %75 = vector.load %arg4[%c10, %c0_63, %c0_64] : memref<12x2x52xf32, #tpu.memory_space<vmem>>, vector<1x2x52xf32>
    %76 = vector.shape_cast %75 : vector<1x2x52xf32> to vector<2x52xf32>
    %cst_65 = arith.constant dense<0.000000e+00> : vector<2x256xf32>
    %77 = tpu.matmul %76, %1, %cst_65 {dimension_numbers = #tpu.dot_dimension_numbers<[1], [0], [0], [1], [0, 0, 1, 1], [], []>} : vector<2x52xf32>, vector<52x256xf32>, vector<2x256xf32> -> vector<2x256xf32>
    %78 = arith.mulf %19, %77 : vector<2x256xf32>
    %79 = arith.addf %74, %78 : vector<2x256xf32>
    %c2_66 = arith.constant 2 : index
    %c0_67 = arith.constant 0 : index
    %c0_68 = arith.constant 0 : index
    %80 = vector.load %arg6[%c2_66, %c0_67, %c0_68] : memref<3x2x256xf32, #tpu.memory_space<vmem>>, vector<1x2x256xf32>
    %81 = vector.shape_cast %80 : vector<1x2x256xf32> to vector<2x256xf32>
    %82 = vector.shape_cast %79 : vector<2x256xf32> to vector<1x2x256xf32>
    tpu.vector_store %arg6[%c2_66, %c0_67, %c0_68], %82 {strides = array<i32>} : memref<3x2x256xf32, #tpu.memory_space<vmem>>, vector<1x2x256xf32>,
    return
  }
  func.func @transform_0(%arg0: i32) -> (i32, i32) {
    %c0_i32 = arith.constant 0 : i32
    %c0_i32_0 = arith.constant 0 : i32
    %c0_i32_1 = arith.constant 0 : i32
    return %c0_i32, %c0_i32_0 : i32, i32
  }
  func.func @transform_1(%arg0: i32) -> (i32, i32, i32) {
    %c0_i32 = arith.constant 0 : i32
    %c0_i32_0 = arith.constant 0 : i32
    %c0_i32_1 = arith.constant 0 : i32
    return %c0_i32, %c0_i32_0, %arg0 : i32, i32, i32
  }
  func.func @transform_2(%arg0: i32) -> (i32, i32, i32) {
    %c0_i32 = arith.constant 0 : i32
    %c0_i32_0 = arith.constant 0 : i32
    %c0_i32_1 = arith.constant 0 : i32
    return %c0_i32, %c0_i32_0, %arg0 : i32, i32, i32
  }
  func.func @transform_3(%arg0: i32) -> (i32, i32, i32) {
    %c0_i32 = arith.constant 0 : i32
    %c0_i32_0 = arith.constant 0 : i32
    %c0_i32_1 = arith.constant 0 : i32
    %c0_i32_2 = arith.constant 0 : i32
    return %c0_i32, %c0_i32_0, %c0_i32_1 : i32, i32, i32
  }
  func.func @transform_4(%arg0: i32) -> (i32, i32) {
    %c0_i32 = arith.constant 0 : i32
    %c0_i32_0 = arith.constant 0 : i32
    return %c0_i32, %arg0 : i32, i32
  }
  func.func @transform_5(%arg0: i32) -> (i32, i32, i32) {
    %c0_i32 = arith.constant 0 : i32
    %c0_i32_0 = arith.constant 0 : i32
    %c0_i32_1 = arith.constant 0 : i32
    return %c0_i32, %c0_i32_0, %arg0 : i32, i32, i32
  }
}

</mosaic_0001>

<bundles_post_ra>
// kernel: smplh_reprojection_forward.1
= control target key start
LH: loop header
LB: loop body
LE: loop exit
PB: predicated region body
PF: predicated region fallthrough
CT: control target
= control target key end

     0   :  { %s4684_s18 = smov 0   ;;  %s4686_s19 = smov 0   ;;  %s5610_s0 = inlined_call_operand.vmem [shape: bf16[2,459], index: 0, kind: input, shape index: {}]   ;;  %s5611_s1 = inlined_call_operand.vmem [shape: bf16[3,459,512], index: 1, kind: input, shape index: {}]   ;;  %s5612_s2 = inlined_call_operand.vmem [shape: f32[3,2,512], index: 2, kind: input, shape index: {}]   ;;  %s5613_s3 = inlined_call_operand.vmem [shape: f32[12,2,52], index: 3, kind: input, shape index: {}]   ;;  %s5614_s4 = inlined_call_operand.vmem [shape: f32[52,512], index: 4, kind: input, shape index: {}]   ;;  %s5615_s5 = inlined_call_operand.vmem [shape: f32[3,2,512], index: 5, kind: output, shape index: {}]  }
   0x1   :  { %s4688_s20 = smov 0  }
   0x2 LB: > { %s3808_s21 = sadd.s32 4294967295, %s4648_s20   ;;  %s4701_s22 = sadd.s32 1, %s4648_s20   ;;  %s4648_s20 = sphi %s4688_s20, %s5620_s20   ;;  %s4644_s19 = sphi %s4686_s19, %s5619_s19   ;;  %s4640_s18 = sphi %s4684_s18, %s5618_s18  }
   0x3   : > { %s40_s23 = ssub.s32 %s4648_s20, %s4701_s22  ;;  %s43_s24 = sadd.s32 1, %s4644_s19 }
   0x4   : > { %p41_p0 = scmp.eq.s32.totalorder %s40_s23, 0  ;;  %p50_p1 = scmp.ne.s32.totalorder %s4644_s19, %s4640_s18 }
   0x5   : > { %p51_p2 = scmp.eq.s32.totalorder %s4648_s20, 0  ;;  %p153_p3 = scmp.eq.s32.totalorder %s3808_s21, 1 }
   0x6   : > { %s4712_s25 = scalar_select %p41_p0, %s4644_s19, %s43_s24  }
   0x7   : > { %p4714_p4 = por %p51_p2, %p50_p1  ;;  %p4718_p5 = por %p153_p3, %p50_p1 }
   0x8   : > { %p3811_p6 = scmp.ge.s32.totalorder %s4648_s20, 2 }
   0xa   : > { %181 = sbr.rel (%p3811_p6) target bundleno = 126 (0x7e), region = 24 }
  0x11   : > { %184 = sbr.rel (!%p4714_p4) target bundleno = 108 (0x6c), region = 28  ;;  %s186_s28 = sand.u32 (%p4714_p4), 1, %s4644_s19  }
  0x12   : > { %s4169_s29 = sshll.u32 (%p4714_p4), %s4648_s20, 3  ;;  %s4331_s30 = smul.u32 (%p4714_p4), 1392, %s186_s28 }
  0x13   : > { %s4730_s8 = scalar_lea.vmem (%p4714_p4), %s5611_s1, %s4169_s29 }
  0x14   : > { %v565_v0 = vld [vmem:[%s4730_s8] sm:$0xff] (%p4714_p4)  ;;  %v567_v1 = vld [vmem:[%s4730_s8 + $0x10] sm:$0xff] (%p4714_p4)  ;;  %s4738_s9 = scalar_lea.vmem (%p4714_p4), [#allocation2], %s4331_s30 }
  0x15   : > { %v569_v2 = vld [vmem:[%s4730_s8 + $0x20] sm:$0xff] (%p4714_p4)  ;;  %v571_v3 = vld [vmem:[%s4730_s8 + $0x30] sm:$0xff] (%p4714_p4)  ;;  %566 = vst [vmem:[%s4738_s9] sm:$0xff] (%p4714_p4), %v565_v0  ;;  %568 = vst [vmem:[%s4738_s9 + $0x8] sm:$0xff] (%p4714_p4), %v567_v1 }
  0x16   : > { %v573_v4 = vld [vmem:[%s4730_s8 + $0x40] sm:$0xff] (%p4714_p4)  ;;  %v575_v5 = vld [vmem:[%s4730_s8 + $0x50] sm:$0xff] (%p4714_p4)  ;;  %570 = vst [vmem:[%s4738_s9 + $0x10] sm:$0xff] (%p4714_p4), %v569_v2  ;;  %572 = vst [vmem:[%s4738_s9 + $0x18] sm:$0xff] (%p4714_p4), %v571_v3 }
  0x17   : > { %574 = vst [vmem:[%s4738_s9 + $0x20] sm:$0xff] (%p4714_p4), %v573_v4  ;;  %576 = vst [vmem:[%s4738_s9 + $0x28] sm:$0xff] (%p4714_p4), %v575_v5  ;;  %v577_v6 = vld [vmem:[%s4730_s8 + $0x60] sm:$0xff] (%p4714_p4)  ;;  %v579_v7 = vld [vmem:[%s4730_s8 + $0x70] sm:$0xff] (%p4714_p4) }
  0x18   : > { %v581_v8 = vld [vmem:[%s4730_s8 + $0x80] sm:$0xff]  ;;  %578 = vst [vmem:[%s4738_s9 + $0x30] sm:$0xff] %v577_v6  ;;  %580 = vst [vmem:[%s4738_s9 + $0x38] sm:$0xff] %v579_v7  ;;  %v583_v9 = vld [vmem:[%s4730_s8 + $0x90] sm:$0xff] }
  0x19   : > { %582 = vst [vmem:[%s4738_s9 + $0x40] sm:$0xff] %v581_v8  ;;  %v585_v10 = vld [vmem:[%s4730_s8 + $0xa0] sm:$0xff]  ;;  %v587_v11 = vld [vmem:[%s4730_s8 + $0xb0] sm:$0xff]  ;;  %584 = vst [vmem:[%s4738_s9 + $0x48] sm:$0xff] %v583_v9 }
  0x1a   : > { %586 = vst [vmem:[%s4738_s9 + $0x50] sm:$0xff] %v585_v10  ;;  %588 = vst [vmem:[%s4738_s9 + $0x58] sm:$0xff] %v587_v11  ;;  %v589_v12 = vld [vmem:[%s4730_s8 + $0xc0] sm:$0xff]  ;;  %v591_v13 = vld [vmem:[%s4730_s8 + $0xd0] sm:$0xff] }
  0x1b   : > { %v593_v14 = vld [vmem:[%s4730_s8 + $0xe0] sm:$0xff]  ;;  %590 = vst [vmem:[%s4738_s9 + $0x60] sm:$0xff] %v589_v12  ;;  %592 = vst [vmem:[%s4738_s9 + $0x68] sm:$0xff] %v591_v13  ;;  %v595_v15 = vld [vmem:[%s4730_s8 + $0xf0] sm:$0xff] }
  0x1c   : > { %594 = vst [vmem:[%s4738_s9 + $0x70] sm:$0xff] %v593_v14  ;;  %v597_v16 = vld [vmem:[%s4730_s8 + $0x100] sm:$0xff]  ;;  %v599_v17 = vld [vmem:[%s4730_s8 + $0x110] sm:$0xff]  ;;  %596 = vst [vmem:[%s4738_s9 + $0x78] sm:$0xff] %v595_v15 }
  0x1d   : > { %598 = vst [vmem:[%s4738_s9 + $0x80] sm:$0xff] %v597_v16  ;;  %600 = vst [vmem:[%s4738_s9 + $0x88] sm:$0xff] %v599_v17  ;;  %v601_v18 = vld [vmem:[%s4730_s8 + $0x120] sm:$0xff]  ;;  %v603_v19 = vld [vmem:[%s4730_s8 + $0x130] sm:$0xff] }
  0x1e   : > { %v605_v20 = vld [vmem:[%s4730_s8 + $0x140] sm:$0xff]  ;;  %602 = vst [vmem:[%s4738_s9 + $0x90] sm:$0xff] %v601_v18  ;;  %604 = vst [vmem:[%s4738_s9 + $0x98] sm:$0xff] %v603_v19  ;;  %v607_v21 = vld [vmem:[%s4730_s8 + $0x150] sm:$0xff] }
  0x1f   : > { %606 = vst [vmem:[%s4738_s9 + $0xa0] sm:$0xff] %v605_v20  ;;  %v609_v22 = vld [vmem:[%s4730_s8 + $0x160] sm:$0xff]  ;;  %v611_v23 = vld [vmem:[%s4730_s8 + $0x170] sm:$0xff]  ;;  %608 = vst [vmem:[%s4738_s9 + $0xa8] sm:$0xff] %v607_v21 }
  0x20   : > { %610 = vst [vmem:[%s4738_s9 + $0xb0] sm:$0xff] %v609_v22  ;;  %612 = vst [vmem:[%s4738_s9 + $0xb8] sm:$0xff] %v611_v23  ;;  %v613_v24 = vld [vmem:[%s4730_s8 + $0x180] sm:$0xff]  ;;  %v615_v25 = vld [vmem:[%s4730_s8 + $0x190] sm:$0xff] }
  0x21   : > { %v617_v26 = vld [vmem:[%s4730_s8 + $0x1a0] sm:$0xff]  ;;  %614 = vst [vmem:[%s4738_s9 + $0xc0] sm:$0xff] %v613_v24  ;;  %616 = vst [vmem:[%s4738_s9 + $0xc8] sm:$0xff] %v615_v25  ;;  %v619_v27 = vld [vmem:[%s4730_s8 + $0x1b0] sm:$0xff] }
  0x22   : > { %618 = vst [vmem:[%s4738_s9 + $0xd0] sm:$0xff] %v617_v26  ;;  %v621_v28 = vld [vmem:[%s4730_s8 + $0x1c0] sm:$0xff]  ;;  %v623_v29 = vld [vmem:[%s4730_s8 + $0x1d0] sm:$0xff]  ;;  %620 = vst [vmem:[%s4738_s9 + $0xd8] sm:$0xff] %v619_v27 }
  0x23   : > { %622 = vst [vmem:[%s4738_s9 + $0xe0] sm:$0xff] %v621_v28  ;;  %624 = vst [vmem:[%s4738_s9 + $0xe8] sm:$0xff] %v623_v29  ;;  %v625_v30 = vld [vmem:[%s4730_s8 + $0x1e0] sm:$0xff]  ;;  %v627_v31 = vld [vmem:[%s4730_s8 + $0x1f0] sm:$0xff] }
  0x24   : > { %v629_v32 = vld [vmem:[%s4730_s8 + $0x200] sm:$0xff]  ;;  %626 = vst [vmem:[%s4738_s9 + $0xf0] sm:$0xff] %v625_v30  ;;  %628 = vst [vmem:[%s4738_s9 + $0xf8] sm:$0xff] %v627_v31  ;;  %v631_v33 = vld [vmem:[%s4730_s8 + $0x210] sm:$0xff] }
  0x25   : > { %630 = vst [vmem:[%s4738_s9 + $0x100] sm:$0xff] %v629_v32  ;;  %v633_v34 = vld [vmem:[%s4730_s8 + $0x220] sm:$0xff]  ;;  %v635_v35 = vld [vmem:[%s4730_s8 + $0x230] sm:$0xff]  ;;  %632 = vst [vmem:[%s4738_s9 + $0x108] sm:$0xff] %v631_v33 }
  0x26   : > { %634 = vst [vmem:[%s4738_s9 + $0x110] sm:$0xff] %v633_v34  ;;  %636 = vst [vmem:[%s4738_s9 + $0x118] sm:$0xff] %v635_v35  ;;  %v637_v36 = vld [vmem:[%s4730_s8 + $0x240] sm:$0xff]  ;;  %v639_v37 = vld [vmem:[%s4730_s8 + $0x250] sm:$0xff] }
  0x27   : > { %v641_v38 = vld [vmem:[%s4730_s8 + $0x260] sm:$0xff]  ;;  %638 = vst [vmem:[%s4738_s9 + $0x120] sm:$0xff] %v637_v36  ;;  %640 = vst [vmem:[%s4738_s9 + $0x128] sm:$0xff] %v639_v37  ;;  %v643_v39 = vld [vmem:[%s4730_s8 + $0x270] sm:$0xff] }
  0x28   : > { %642 = vst [vmem:[%s4738_s9 + $0x130] sm:$0xff] %v641_v38  ;;  %v645_v40 = vld [vmem:[%s4730_s8 + $0x280] sm:$0xff]  ;;  %v647_v41 = vld [vmem:[%s4730_s8 + $0x290] sm:$0xff]  ;;  %644 = vst [vmem:[%s4738_s9 + $0x138] sm:$0xff] %v643_v39 }
  0x29   : > { %646 = vst [vmem:[%s4738_s9 + $0x140] sm:$0xff] %v645_v40  ;;  %648 = vst [vmem:[%s4738_s9 + $0x148] sm:$0xff] %v647_v41  ;;  %v649_v42 = vld [vmem:[%s4730_s8 + $0x2a0] sm:$0xff]  ;;  %v651_v43 = vld [vmem:[%s4730_s8 + $0x2b0] sm:$0xff] }
  0x2a   : > { %v653_v44 = vld [vmem:[%s4730_s8 + $0x2c0] sm:$0xff]  ;;  %650 = vst [vmem:[%s4738_s9 + $0x150] sm:$0xff] %v649_v42  ;;  %652 = vst [vmem:[%s4738_s9 + $0x158] sm:$0xff] %v651_v43  ;;  %v655_v45 = vld [vmem:[%s4730_s8 + $0x2d0] sm:$0xff] }
  0x2b   : > { %654 = vst [vmem:[%s4738_s9 + $0x160] sm:$0xff] %v653_v44  ;;  %v657_v46 = vld [vmem:[%s4730_s8 + $0x2e0] sm:$0xff]  ;;  %v659_v47 = vld [vmem:[%s4730_s8 + $0x2f0] sm:$0xff]  ;;  %656 = vst [vmem:[%s4738_s9 + $0x168] sm:$0xff] %v655_v45 }
  0x2c   : > { %658 = vst [vmem:[%s4738_s9 + $0x170] sm:$0xff] %v657_v46  ;;  %660 = vst [vmem:[%s4738_s9 + $0x178] sm:$0xff] %v659_v47  ;;  %v661_v48 = vld [vmem:[%s4730_s8 + $0x300] sm:$0xff]  ;;  %v663_v49 = vld [vmem:[%s4730_s8 + $0x310] sm:$0xff] }
  0x2d   : > { %v665_v50 = vld [vmem:[%s4730_s8 + $0x320] sm:$0xff]  ;;  %662 = vst [vmem:[%s4738_s9 + $0x180] sm:$0xff] %v661_v48  ;;  %664 = vst [vmem:[%s4738_s9 + $0x188] sm:$0xff] %v663_v49  ;;  %v667_v51 = vld [vmem:[%s4730_s8 + $0x330] sm:$0xff] }
  0x2e   : > { %666 = vst [vmem:[%s4738_s9 + $0x190] sm:$0xff] %v665_v50  ;;  %v669_v52 = vld [vmem:[%s4730_s8 + $0x340] sm:$0xff]  ;;  %v671_v53 = vld [vmem:[%s4730_s8 + $0x350] sm:$0xff]  ;;  %668 = vst [vmem:[%s4738_s9 + $0x198] sm:$0xff] %v667_v51 }
  0x2f   : > { %670 = vst [vmem:[%s4738_s9 + $0x1a0] sm:$0xff] %v669_v52  ;;  %672 = vst [vmem:[%s4738_s9 + $0x1a8] sm:$0xff] %v671_v53  ;;  %v673_v54 = vld [vmem:[%s4730_s8 + $0x360] sm:$0xff]  ;;  %v675_v55 = vld [vmem:[%s4730_s8 + $0x370] sm:$0xff] }
  0x30   : > { %v677_v56 = vld [vmem:[%s4730_s8 + $0x380] sm:$0xff]  ;;  %674 = vst [vmem:[%s4738_s9 + $0x1b0] sm:$0xff] %v673_v54  ;;  %676 = vst [vmem:[%s4738_s9 + $0x1b8] sm:$0xff] %v675_v55  ;;  %v679_v57 = vld [vmem:[%s4730_s8 + $0x390] sm:$0xff] }
  0x31   : > { %678 = vst [vmem:[%s4738_s9 + $0x1c0] sm:$0xff] %v677_v56  ;;  %v681_v58 = vld [vmem:[%s4730_s8 + $0x3a0] sm:$0xff]  ;;  %v683_v59 = vld [vmem:[%s4730_s8 + $0x3b0] sm:$0xff]  ;;  %680 = vst [vmem:[%s4738_s9 + $0x1c8] sm:$0xff] %v679_v57 }
  0x32   : > { %682 = vst [vmem:[%s4738_s9 + $0x1d0] sm:$0xff] %v681_v58  ;;  %684 = vst [vmem:[%s4738_s9 + $0x1d8] sm:$0xff] %v683_v59  ;;  %v685_v60 = vld [vmem:[%s4730_s8 + $0x3c0] sm:$0xff]  ;;  %v687_v61 = vld [vmem:[%s4730_s8 + $0x3d0] sm:$0xff] }
  0x33   : > { %v689_v62 = vld [vmem:[%s4730_s8 + $0x3e0] sm:$0xff]  ;;  %686 = vst [vmem:[%s4738_s9 + $0x1e0] sm:$0xff] %v685_v60  ;;  %688 = vst [vmem:[%s4738_s9 + $0x1e8] sm:$0xff] %v687_v61  ;;  %v691_v63 = vld [vmem:[%s4730_s8 + $0x3f0] sm:$0xff] }
  0x34   : > { %690 = vst [vmem:[%s4738_s9 + $0x1f0] sm:$0xff] %v689_v62  ;;  %v693_v0 = vld [vmem:[%s4730_s8 + $0x400] sm:$0xff]  ;;  %v695_v1 = vld [vmem:[%s4730_s8 + $0x410] sm:$0xff]  ;;  %692 = vst [vmem:[%s4738_s9 + $0x1f8] sm:$0xff] %v691_v63 }
  0x35   : > { %694 = vst [vmem:[%s4738_s9 + $0x200] sm:$0xff] %v693_v0  ;;  %696 = vst [vmem:[%s4738_s9 + $0x208] sm:$0xff] %v695_v1  ;;  %v697_v2 = vld [vmem:[%s4730_s8 + $0x420] sm:$0xff]  ;;  %v699_v3 = vld [vmem:[%s4730_s8 + $0x430] sm:$0xff] }
  0x36   : > { %v701_v4 = vld [vmem:[%s4730_s8 + $0x440] sm:$0xff]  ;;  %698 = vst [vmem:[%s4738_s9 + $0x210] sm:$0xff] %v697_v2  ;;  %700 = vst [vmem:[%s4738_s9 + $0x218] sm:$0xff] %v699_v3  ;;  %v703_v5 = vld [vmem:[%s4730_s8 + $0x450] sm:$0xff] }
  0x37   : > { %702 = vst [vmem:[%s4738_s9 + $0x220] sm:$0xff] %v701_v4  ;;  %v705_v6 = vld [vmem:[%s4730_s8 + $0x460] sm:$0xff]  ;;  %v707_v7 = vld [vmem:[%s4730_s8 + $0x470] sm:$0xff]  ;;  %704 = vst [vmem:[%s4738_s9 + $0x228] sm:$0xff] %v703_v5 }
  0x38   : > { %706 = vst [vmem:[%s4738_s9 + $0x230] sm:$0xff] %v705_v6  ;;  %708 = vst [vmem:[%s4738_s9 + $0x238] sm:$0xff] %v707_v7  ;;  %v709_v8 = vld [vmem:[%s4730_s8 + $0x480] sm:$0xff]  ;;  %v711_v9 = vld [vmem:[%s4730_s8 + $0x490] sm:$0xff] }
  0x39   : > { %v713_v10 = vld [vmem:[%s4730_s8 + $0x4a0] sm:$0xff]  ;;  %710 = vst [vmem:[%s4738_s9 + $0x240] sm:$0xff] %v709_v8  ;;  %712 = vst [vmem:[%s4738_s9 + $0x248] sm:$0xff] %v711_v9  ;;  %v715_v11 = vld [vmem:[%s4730_s8 + $0x4b0] sm:$0xff] }
  0x3a   : > { %714 = vst [vmem:[%s4738_s9 + $0x250] sm:$0xff] %v713_v10  ;;  %v717_v12 = vld [vmem:[%s4730_s8 + $0x4c0] sm:$0xff]  ;;  %v719_v13 = vld [vmem:[%s4730_s8 + $0x4d0] sm:$0xff]  ;;  %716 = vst [vmem:[%s4738_s9 + $0x258] sm:$0xff] %v715_v11 }
  0x3b   : > { %718 = vst [vmem:[%s4738_s9 + $0x260] sm:$0xff] %v717_v12  ;;  %720 = vst [vmem:[%s4738_s9 + $0x268] sm:$0xff] %v719_v13  ;;  %v721_v14 = vld [vmem:[%s4730_s8 + $0x4e0] sm:$0xff]  ;;  %v723_v15 = vld [vmem:[%s4730_s8 + $0x4f0] sm:$0xff] }
  0x3c   : > { %v725_v16 = vld [vmem:[%s4730_s8 + $0x500] sm:$0xff]  ;;  %722 = vst [vmem:[%s4738_s9 + $0x270] sm:$0xff] %v721_v14  ;;  %724 = vst [vmem:[%s4738_s9 + $0x278] sm:$0xff] %v723_v15  ;;  %v727_v17 = vld [vmem:[%s4730_s8 + $0x510] sm:$0xff] }
  0x3d   : > { %726 = vst [vmem:[%s4738_s9 + $0x280] sm:$0xff] %v725_v16  ;;  %v729_v18 = vld [vmem:[%s4730_s8 + $0x520] sm:$0xff]  ;;  %v731_v19 = vld [vmem:[%s4730_s8 + $0x530] sm:$0xff]  ;;  %728 = vst [vmem:[%s4738_s9 + $0x288] sm:$0xff] %v727_v17 }
  0x3e   : > { %730 = vst [vmem:[%s4738_s9 + $0x290] sm:$0xff] %v729_v18  ;;  %732 = vst [vmem:[%s4738_s9 + $0x298] sm:$0xff] %v731_v19  ;;  %v733_v20 = vld [vmem:[%s4730_s8 + $0x540] sm:$0xff]  ;;  %v735_v21 = vld [vmem:[%s4730_s8 + $0x550] sm:$0xff] }
  0x3f   : > { %v737_v22 = vld [vmem:[%s4730_s8 + $0x560] sm:$0xff]  ;;  %734 = vst [vmem:[%s4738_s9 + $0x2a0] sm:$0xff] %v733_v20  ;;  %736 = vst [vmem:[%s4738_s9 + $0x2a8] sm:$0xff] %v735_v21  ;;  %v739_v23 = vld [vmem:[%s4730_s8 + $0x570] sm:$0xff] }
  0x40   : > { %738 = vst [vmem:[%s4738_s9 + $0x2b0] sm:$0xff] %v737_v22  ;;  %v741_v24 = vld [vmem:[%s4730_s8 + $0x580] sm:$0xff]  ;;  %v743_v25 = vld [vmem:[%s4730_s8 + $0x590] sm:$0xff]  ;;  %740 = vst [vmem:[%s4738_s9 + $0x2b8] sm:$0xff] %v739_v23 }
  0x41   : > { %742 = vst [vmem:[%s4738_s9 + $0x2c0] sm:$0xff] %v741_v24  ;;  %744 = vst [vmem:[%s4738_s9 + $0x2c8] sm:$0xff] %v743_v25  ;;  %v745_v26 = vld [vmem:[%s4730_s8 + $0x5a0] sm:$0xff]  ;;  %v747_v27 = vld [vmem:[%s4730_s8 + $0x5b0] sm:$0xff] }
  0x42   : > { %v749_v28 = vld [vmem:[%s4730_s8 + $0x5c0] sm:$0xff]  ;;  %746 = vst [vmem:[%s4738_s9 + $0x2d0] sm:$0xff] %v745_v26  ;;  %748 = vst [vmem:[%s4738_s9 + $0x2d8] sm:$0xff] %v747_v27  ;;  %v751_v29 = vld [vmem:[%s4730_s8 + $0x5d0] sm:$0xff] }
  0x43   : > { %750 = vst [vmem:[%s4738_s9 + $0x2e0] sm:$0xff] %v749_v28  ;;  %v753_v30 = vld [vmem:[%s4730_s8 + $0x5e0] sm:$0xff]  ;;  %v755_v31 = vld [vmem:[%s4730_s8 + $0x5f0] sm:$0xff]  ;;  %752 = vst [vmem:[%s4738_s9 + $0x2e8] sm:$0xff] %v751_v29 }
  0x44   : > { %754 = vst [vmem:[%s4738_s9 + $0x2f0] sm:$0xff] %v753_v30  ;;  %756 = vst [vmem:[%s4738_s9 + $0x2f8] sm:$0xff] %v755_v31  ;;  %v757_v32 = vld [vmem:[%s4730_s8 + $0x600] sm:$0xff]  ;;  %v759_v33 = vld [vmem:[%s4730_s8 + $0x610] sm:$0xff] }
  0x45   : > { %v761_v34 = vld [vmem:[%s4730_s8 + $0x620] sm:$0xff]  ;;  %758 = vst [vmem:[%s4738_s9 + $0x300] sm:$0xff] %v757_v32  ;;  %760 = vst [vmem:[%s4738_s9 + $0x308] sm:$0xff] %v759_v33  ;;  %v763_v35 = vld [vmem:[%s4730_s8 + $0x630] sm:$0xff] }
  0x46   : > { %762 = vst [vmem:[%s4738_s9 + $0x310] sm:$0xff] %v761_v34  ;;  %v765_v36 = vld [vmem:[%s4730_s8 + $0x640] sm:$0xff]  ;;  %v767_v37 = vld [vmem:[%s4730_s8 + $0x650] sm:$0xff]  ;;  %764 = vst [vmem:[%s4738_s9 + $0x318] sm:$0xff] %v763_v35 }
  0x47   : > { %766 = vst [vmem:[%s4738_s9 + $0x320] sm:$0xff] %v765_v36  ;;  %768 = vst [vmem:[%s4738_s9 + $0x328] sm:$0xff] %v767_v37  ;;  %v769_v38 = vld [vmem:[%s4730_s8 + $0x660] sm:$0xff]  ;;  %v771_v39 = vld [vmem:[%s4730_s8 + $0x670] sm:$0xff] }
  0x48   : > { %v773_v40 = vld [vmem:[%s4730_s8 + $0x680] sm:$0xff]  ;;  %770 = vst [vmem:[%s4738_s9 + $0x330] sm:$0xff] %v769_v38  ;;  %772 = vst [vmem:[%s4738_s9 + $0x338] sm:$0xff] %v771_v39  ;;  %v775_v41 = vld [vmem:[%s4730_s8 + $0x690] sm:$0xff] }
  0x49   : > { %774 = vst [vmem:[%s4738_s9 + $0x340] sm:$0xff] %v773_v40  ;;  %v777_v42 = vld [vmem:[%s4730_s8 + $0x6a0] sm:$0xff]  ;;  %v779_v43 = vld [vmem:[%s4730_s8 + $0x6b0] sm:$0xff]  ;;  %776 = vst [vmem:[%s4738_s9 + $0x348] sm:$0xff] %v775_v41 }
  0x4a   : > { %778 = vst [vmem:[%s4738_s9 + $0x350] sm:$0xff] %v777_v42  ;;  %780 = vst [vmem:[%s4738_s9 + $0x358] sm:$0xff] %v779_v43  ;;  %v781_v44 = vld [vmem:[%s4730_s8 + $0x6c0] sm:$0xff]  ;;  %v783_v45 = vld [vmem:[%s4730_s8 + $0x6d0] sm:$0xff] }
  0x4b   : > { %v785_v46 = vld [vmem:[%s4730_s8 + $0x6e0] sm:$0xff]  ;;  %782 = vst [vmem:[%s4738_s9 + $0x360] sm:$0xff] %v781_v44  ;;  %784 = vst [vmem:[%s4738_s9 + $0x368] sm:$0xff] %v783_v45  ;;  %v787_v47 = vld [vmem:[%s4730_s8 + $0x6f0] sm:$0xff] }
  0x4c   : > { %786 = vst [vmem:[%s4738_s9 + $0x370] sm:$0xff] %v785_v46  ;;  %v789_v48 = vld [vmem:[%s4730_s8 + $0x700] sm:$0xff]  ;;  %v791_v49 = vld [vmem:[%s4730_s8 + $0x710] sm:$0xff]  ;;  %788 = vst [vmem:[%s4738_s9 + $0x378] sm:$0xff] %v787_v47 }
  0x4d   : > { %790 = vst [vmem:[%s4738_s9 + $0x380] sm:$0xff] %v789_v48  ;;  %792 = vst [vmem:[%s4738_s9 + $0x388] sm:$0xff] %v791_v49  ;;  %v793_v50 = vld [vmem:[%s4730_s8 + $0x720] sm:$0xff]  ;;  %v795_v51 = vld [vmem:[%s4730_s8 + $0x730] sm:$0xff] }
  0x4e   : > { %v797_v52 = vld [vmem:[%s4730_s8 + $0x740] sm:$0xff]  ;;  %794 = vst [vmem:[%s4738_s9 + $0x390] sm:$0xff] %v793_v50  ;;  %796 = vst [vmem:[%s4738_s9 + $0x398] sm:$0xff] %v795_v51  ;;  %v799_v53 = vld [vmem:[%s4730_s8 + $0x750] sm:$0xff] }
  0x4f   : > { %798 = vst [vmem:[%s4738_s9 + $0x3a0] sm:$0xff] %v797_v52  ;;  %v801_v54 = vld [vmem:[%s4730_s8 + $0x760] sm:$0xff]  ;;  %v803_v55 = vld [vmem:[%s4730_s8 + $0x770] sm:$0xff]  ;;  %800 = vst [vmem:[%s4738_s9 + $0x3a8] sm:$0xff] %v799_v53 }
  0x50   : > { %802 = vst [vmem:[%s4738_s9 + $0x3b0] sm:$0xff] %v801_v54  ;;  %804 = vst [vmem:[%s4738_s9 + $0x3b8] sm:$0xff] %v803_v55  ;;  %v805_v56 = vld [vmem:[%s4730_s8 + $0x780] sm:$0xff]  ;;  %v807_v57 = vld [vmem:[%s4730_s8 + $0x790] sm:$0xff] }
  0x51   : > { %v809_v58 = vld [vmem:[%s4730_s8 + $0x7a0] sm:$0xff]  ;;  %806 = vst [vmem:[%s4738_s9 + $0x3c0] sm:$0xff] %v805_v56  ;;  %808 = vst [vmem:[%s4738_s9 + $0x3c8] sm:$0xff] %v807_v57  ;;  %v811_v59 = vld [vmem:[%s4730_s8 + $0x7b0] sm:$0xff] }
  0x52   : > { %810 = vst [vmem:[%s4738_s9 + $0x3d0] sm:$0xff] %v809_v58  ;;  %v813_v60 = vld [vmem:[%s4730_s8 + $0x7c0] sm:$0xff]  ;;  %v815_v61 = vld [vmem:[%s4730_s8 + $0x7d0] sm:$0xff]  ;;  %812 = vst [vmem:[%s4738_s9 + $0x3d8] sm:$0xff] %v811_v59 }
  0x53   : > { %814 = vst [vmem:[%s4738_s9 + $0x3e0] sm:$0xff] %v813_v60  ;;  %816 = vst [vmem:[%s4738_s9 + $0x3e8] sm:$0xff] %v815_v61  ;;  %v817_v62 = vld [vmem:[%s4730_s8 + $0x7e0] sm:$0xff]  ;;  %v819_v63 = vld [vmem:[%s4730_s8 + $0x7f0] sm:$0xff] }
  0x54   : > { %v821_v0 = vld [vmem:[%s4730_s8 + $0x800] sm:$0xff]  ;;  %818 = vst [vmem:[%s4738_s9 + $0x3f0] sm:$0xff] %v817_v62  ;;  %820 = vst [vmem:[%s4738_s9 + $0x3f8] sm:$0xff] %v819_v63  ;;  %v823_v1 = vld [vmem:[%s4730_s8 + $0x810] sm:$0xff] }
  0x55   : > { %822 = vst [vmem:[%s4738_s9 + $0x400] sm:$0xff] %v821_v0  ;;  %v825_v2 = vld [vmem:[%s4730_s8 + $0x820] sm:$0xff]  ;;  %v827_v3 = vld [vmem:[%s4730_s8 + $0x830] sm:$0xff]  ;;  %824 = vst [vmem:[%s4738_s9 + $0x408] sm:$0xff] %v823_v1 }
  0x56   : > { %826 = vst [vmem:[%s4738_s9 + $0x410] sm:$0xff] %v825_v2  ;;  %828 = vst [vmem:[%s4738_s9 + $0x418] sm:$0xff] %v827_v3  ;;  %v829_v4 = vld [vmem:[%s4730_s8 + $0x840] sm:$0xff]  ;;  %v831_v5 = vld [vmem:[%s4730_s8 + $0x850] sm:$0xff] }
  0x57   : > { %v833_v6 = vld [vmem:[%s4730_s8 + $0x860] sm:$0xff]  ;;  %830 = vst [vmem:[%s4738_s9 + $0x420] sm:$0xff] %v829_v4  ;;  %832 = vst [vmem:[%s4738_s9 + $0x428] sm:$0xff] %v831_v5  ;;  %v835_v7 = vld [vmem:[%s4730_s8 + $0x870] sm:$0xff] }
  0x58   : > { %834 = vst [vmem:[%s4738_s9 + $0x430] sm:$0xff] %v833_v6  ;;  %v837_v8 = vld [vmem:[%s4730_s8 + $0x880] sm:$0xff]  ;;  %v839_v9 = vld [vmem:[%s4730_s8 + $0x890] sm:$0xff]  ;;  %836 = vst [vmem:[%s4738_s9 + $0x438] sm:$0xff] %v835_v7 }
  0x59   : > { %838 = vst [vmem:[%s4738_s9 + $0x440] sm:$0xff] %v837_v8  ;;  %840 = vst [vmem:[%s4738_s9 + $0x448] sm:$0xff] %v839_v9  ;;  %v841_v10 = vld [vmem:[%s4730_s8 + $0x8a0] sm:$0xff]  ;;  %v843_v11 = vld [vmem:[%s4730_s8 + $0x8b0] sm:$0xff] }
  0x5a   : > { %v845_v12 = vld [vmem:[%s4730_s8 + $0x8c0] sm:$0xff]  ;;  %842 = vst [vmem:[%s4738_s9 + $0x450] sm:$0xff] %v841_v10  ;;  %844 = vst [vmem:[%s4738_s9 + $0x458] sm:$0xff] %v843_v11  ;;  %v847_v13 = vld [vmem:[%s4730_s8 + $0x8d0] sm:$0xff] }
  0x5b   : > { %846 = vst [vmem:[%s4738_s9 + $0x460] sm:$0xff] %v845_v12  ;;  %v849_v14 = vld [vmem:[%s4730_s8 + $0x8e0] sm:$0xff]  ;;  %v851_v15 = vld [vmem:[%s4730_s8 + $0x8f0] sm:$0xff]  ;;  %848 = vst [vmem:[%s4738_s9 + $0x468] sm:$0xff] %v847_v13 }
  0x5c   : > { %850 = vst [vmem:[%s4738_s9 + $0x470] sm:$0xff] %v849_v14  ;;  %852 = vst [vmem:[%s4738_s9 + $0x478] sm:$0xff] %v851_v15  ;;  %v853_v16 = vld [vmem:[%s4730_s8 + $0x900] sm:$0xff]  ;;  %v855_v17 = vld [vmem:[%s4730_s8 + $0x910] sm:$0xff] }
  0x5d   : > { %v857_v18 = vld [vmem:[%s4730_s8 + $0x920] sm:$0xff]  ;;  %854 = vst [vmem:[%s4738_s9 + $0x480] sm:$0xff] %v853_v16  ;;  %856 = vst [vmem:[%s4738_s9 + $0x488] sm:$0xff] %v855_v17  ;;  %v859_v19 = vld [vmem:[%s4730_s8 + $0x930] sm:$0xff] }
  0x5e   : > { %858 = vst [vmem:[%s4738_s9 + $0x490] sm:$0xff] %v857_v18  ;;  %v861_v20 = vld [vmem:[%s4730_s8 + $0x940] sm:$0xff]  ;;  %v863_v21 = vld [vmem:[%s4730_s8 + $0x950] sm:$0xff]  ;;  %860 = vst [vmem:[%s4738_s9 + $0x498] sm:$0xff] %v859_v19 }
  0x5f   : > { %862 = vst [vmem:[%s4738_s9 + $0x4a0] sm:$0xff] %v861_v20  ;;  %864 = vst [vmem:[%s4738_s9 + $0x4a8] sm:$0xff] %v863_v21  ;;  %v865_v22 = vld [vmem:[%s4730_s8 + $0x960] sm:$0xff]  ;;  %v867_v23 = vld [vmem:[%s4730_s8 + $0x970] sm:$0xff] }
  0x60   : > { %v869_v24 = vld [vmem:[%s4730_s8 + $0x980] sm:$0xff]  ;;  %866 = vst [vmem:[%s4738_s9 + $0x4b0] sm:$0xff] %v865_v22  ;;  %868 = vst [vmem:[%s4738_s9 + $0x4b8] sm:$0xff] %v867_v23  ;;  %v871_v25 = vld [vmem:[%s4730_s8 + $0x990] sm:$0xff] }
  0x61   : > { %870 = vst [vmem:[%s4738_s9 + $0x4c0] sm:$0xff] %v869_v24  ;;  %v873_v26 = vld [vmem:[%s4730_s8 + $0x9a0] sm:$0xff]  ;;  %v875_v27 = vld [vmem:[%s4730_s8 + $0x9b0] sm:$0xff]  ;;  %872 = vst [vmem:[%s4738_s9 + $0x4c8] sm:$0xff] %v871_v25 }
  0x62   : > { %874 = vst [vmem:[%s4738_s9 + $0x4d0] sm:$0xff] %v873_v26  ;;  %876 = vst [vmem:[%s4738_s9 + $0x4d8] sm:$0xff] %v875_v27  ;;  %v877_v28 = vld [vmem:[%s4730_s8 + $0x9c0] sm:$0xff]  ;;  %v879_v29 = vld [vmem:[%s4730_s8 + $0x9d0] sm:$0xff] }
  0x63   : > { %v881_v30 = vld [vmem:[%s4730_s8 + $0x9e0] sm:$0xff]  ;;  %878 = vst [vmem:[%s4738_s9 + $0x4e0] sm:$0xff] %v877_v28  ;;  %880 = vst [vmem:[%s4738_s9 + $0x4e8] sm:$0xff] %v879_v29  ;;  %v883_v31 = vld [vmem:[%s4730_s8 + $0x9f0] sm:$0xff] }
  0x64   : > { %882 = vst [vmem:[%s4738_s9 + $0x4f0] sm:$0xff] %v881_v30  ;;  %v885_v32 = vld [vmem:[%s4730_s8 + $0xa00] sm:$0xff]  ;;  %v887_v33 = vld [vmem:[%s4730_s8 + $0xa10] sm:$0xff]  ;;  %884 = vst [vmem:[%s4738_s9 + $0x4f8] sm:$0xff] %v883_v31 }
  0x65   : > { %886 = vst [vmem:[%s4738_s9 + $0x500] sm:$0xff] %v885_v32  ;;  %888 = vst [vmem:[%s4738_s9 + $0x508] sm:$0xff] %v887_v33  ;;  %v889_v34 = vld [vmem:[%s4730_s8 + $0xa20] sm:$0xff]  ;;  %v891_v35 = vld [vmem:[%s4730_s8 + $0xa30] sm:$0xff] }
  0x66   : > { %v893_v36 = vld [vmem:[%s4730_s8 + $0xa40] sm:$0xff]  ;;  %890 = vst [vmem:[%s4738_s9 + $0x510] sm:$0xff] %v889_v34  ;;  %892 = vst [vmem:[%s4738_s9 + $0x518] sm:$0xff] %v891_v35  ;;  %v895_v37 = vld [vmem:[%s4730_s8 + $0xa50] sm:$0xff] }
  0x67   : > { %894 = vst [vmem:[%s4738_s9 + $0x520] sm:$0xff] %v893_v36  ;;  %v897_v38 = vld [vmem:[%s4730_s8 + $0xa60] sm:$0xff]  ;;  %v899_v39 = vld [vmem:[%s4730_s8 + $0xa70] sm:$0xff]  ;;  %896 = vst [vmem:[%s4738_s9 + $0x528] sm:$0xff] %v895_v37 }
  0x68   : > { %898 = vst [vmem:[%s4738_s9 + $0x530] sm:$0xff] %v897_v38  ;;  %900 = vst [vmem:[%s4738_s9 + $0x538] sm:$0xff] %v899_v39  ;;  %v901_v40 = vld [vmem:[%s4730_s8 + $0xa80] sm:$0xff]  ;;  %v903_v41 = vld [vmem:[%s4730_s8 + $0xa90] sm:$0xff] }
  0x69   : > { %v905_v42 = vld [vmem:[%s4730_s8 + $0xaa0] sm:$0xff]  ;;  %902 = vst [vmem:[%s4738_s9 + $0x540] sm:$0xff] %v901_v40  ;;  %904 = vst [vmem:[%s4738_s9 + $0x548] sm:$0xff] %v903_v41  ;;  %v907_v43 = vld [vmem:[%s4730_s8 + $0xab0] sm:$0xff] }
  0x6a   : > { %906 = vst [vmem:[%s4738_s9 + $0x550] sm:$0xff] %v905_v42  ;;  %v909_v44 = vld [vmem:[%s4730_s8 + $0xac0] sm:$0xff]  ;;  %v911_v45 = vld [vmem:[%s4730_s8 + $0xad0] sm:$0xff]  ;;  %908 = vst [vmem:[%s4738_s9 + $0x558] sm:$0xff] %v907_v43 }
  0x6b   : > { %910 = vst [vmem:[%s4738_s9 + $0x560] sm:$0xff] %v909_v44  ;;  %912 = vst [vmem:[%s4738_s9 + $0x568] sm:$0xff] %v911_v45 }
  0x6c PF: > { %918 = sbr.rel (!%p4714_p4) target bundleno = 115 (0x73), region = 66  ;;  %s920_s10 = sand.u32 (%p4714_p4), 1, %s4644_s19  }
  0x6d   : > { %s4170_s11 = sshll.u32 (%p4714_p4), %s4648_s20, 2  ;;  %s4332_s12 = smul.u32 (%p4714_p4), 12, %s920_s10 }
  0x6e   : > { %s925_s15 = scalar_lea.vmem (%p4714_p4), %s5612_s2, %s4170_s11 }
  0x6f   : > { %v941_v46 = vld [vmem:[%s925_s15] sm:$0xf] (%p4714_p4)  ;;  %v943_v47 = vld [vmem:[%s925_s15 + $0x8] sm:$0xf] (%p4714_p4)  ;;  %v945_v48 = vld [vmem:[%s925_s15 + $0x10] sm:$0xf] (%p4714_p4) }
  0x70   : > { %s922_s16 = scalar_lea.vmem (%p4714_p4), [#allocation3], %s4332_s12 }
  0x71   : > { %942 = vst [vmem:[%s922_s16] sm:$0xf] (%p4714_p4), %v941_v46  ;;  %944 = vst [vmem:[%s922_s16 + $0x4] sm:$0xf] (%p4714_p4), %v943_v47 }
  0x72   : > { %946 = vst [vmem:[%s922_s16 + $0x8] sm:$0xf] (%p4714_p4), %v945_v48 }
  0x73 PF: > { %975 = sbr.rel (!%p4714_p4) target bundleno = 126 (0x7e), region = 107  ;;  %s977_s17 = sand.u32 (%p4714_p4), 1, %s4644_s19  }
  0x74   : > { %s4171_s23 = sshll.u32 (%p4714_p4), %s4648_s20, 4  ;;  %s4333_s24 = smul.u32 (%p4714_p4), 112, %s977_s17 }
  0x75   : > { %s982_s30 = scalar_lea.vmem (%p4714_p4), %s5614_s4, %s4171_s23 }
  0x76   : > { %v995_v49 = vld [vmem:[%s982_s30] sm:$0xff] (%p4714_p4)  ;;  %v997_v50 = vld [vmem:[%s982_s30 + $0x8] sm:$0xff] (%p4714_p4)  ;;  %s979_s6 = scalar_lea.vmem (%p4714_p4), [#allocation4], %s4333_s24 }
  0x77   : > { %v999_v51 = vld [vmem:[%s982_s30 + $0x20] sm:$0xff] (%p4714_p4)  ;;  %v1001_v52 = vld [vmem:[%s982_s30 + $0x28] sm:$0xff] (%p4714_p4)  ;;  %996 = vst [vmem:[%s979_s6] sm:$0xff] (%p4714_p4), %v995_v49  ;;  %998 = vst [vmem:[%s979_s6 + $0x8] sm:$0xff] (%p4714_p4), %v997_v50 }
  0x78   : > { %v1003_v53 = vld [vmem:[%s982_s30 + $0x40] sm:$0xff] (%p4714_p4)  ;;  %v1005_v54 = vld [vmem:[%s982_s30 + $0x48] sm:$0xff] (%p4714_p4)  ;;  %1000 = vst [vmem:[%s979_s6 + $0x10] sm:$0xff] (%p4714_p4), %v999_v51  ;;  %1002 = vst [vmem:[%s979_s6 + $0x18] sm:$0xff] (%p4714_p4), %v1001_v52 }
  0x79   : > { %1004 = vst [vmem:[%s979_s6 + $0x20] sm:$0xff] (%p4714_p4), %v1003_v53  ;;  %1006 = vst [vmem:[%s979_s6 + $0x28] sm:$0xff] (%p4714_p4), %v1005_v54  ;;  %v1007_v55 = vld [vmem:[%s982_s30 + $0x60] sm:$0xff] (%p4714_p4)  ;;  %v1009_v56 = vld [vmem:[%s982_s30 + $0x68] sm:$0xff] (%p4714_p4) }
  0x7a   : > { %v1011_v57 = vld [vmem:[%s982_s30 + $0x80] sm:$0xff]  ;;  %1008 = vst [vmem:[%s979_s6 + $0x30] sm:$0xff] %v1007_v55  ;;  %1010 = vst [vmem:[%s979_s6 + $0x38] sm:$0xff] %v1009_v56  ;;  %v1013_v58 = vld [vmem:[%s982_s30 + $0x88] sm:$0xff] }
  0x7b   : > { %1012 = vst [vmem:[%s979_s6 + $0x40] sm:$0xff] %v1011_v57  ;;  %v1015_v59 = vld [vmem:[%s982_s30 + $0xa0] sm:$0xff]  ;;  %v1017_v60 = vld [vmem:[%s982_s30 + $0xa8] sm:$0xff]  ;;  %1014 = vst [vmem:[%s979_s6 + $0x48] sm:$0xff] %v1013_v58 }
  0x7c   : > { %1016 = vst [vmem:[%s979_s6 + $0x50] sm:$0xff] %v1015_v59  ;;  %1018 = vst [vmem:[%s979_s6 + $0x58] sm:$0xff] %v1017_v60  ;;  %v1019_v61 = vld [vmem:[%s982_s30 + $0xc0] sm:$0xff]  ;;  %v1021_v62 = vld [vmem:[%s982_s30 + $0xc8] sm:$0xff] }
  0x7d   : > { %1020 = vst [vmem:[%s979_s6 + $0x60] sm:$0xff] %v1019_v61  ;;  %1022 = vst [vmem:[%s979_s6 + $0x68] sm:$0xff] %v1021_v62 }
  0x7e PF: > { %p3818_p7 = scmp.ge.s32.totalorder %s4648_s20, 1  ;;  %p1027_p8 = scmp.lt.s32.totalorder %s4648_s20, 3 }
  0x80   : > { %p1028_p9 = pnand %p3818_p7, %p1027_p8 }
  0x81   : > { %s5099_s26 = sand.u32 (!%p1028_p9), 1, %s4640_s18   ;;  %v5104_v63 = vld.sshfl [vmem:[%s5610_s0] sm:$0x33 pattern:$0x75316420] (!%p1028_p9)  ;;  %v1173_v0 = vlaneseq (!%p1028_p9)  ;;  %vm1477_vm0 = vcmask (!%p1028_p9), 613376  }
  0x82   : > { %1031 = sbr.rel (%p1028_p9) target bundleno = 631 (0x277), region = 130  ;;  %v4650_v1 = vmov (!%p1028_p9), 1966171168   ;;  %v1169_v5 = vcombine.high (!%p1028_p9), %v5104_v63, %v5104_v63  ;;  %vm1481_vm1 = vcmask (!%p1028_p9), 1044480   ;;  %vm1482_vm2 = vcmask (!%p1028_p9), 1045504  }
  0x83   : > { %s4334_s9 = smul.u32 (!%p1028_p9), 1392, %s5099_s26  ;;  %v1171_v2 = vunpack.c.l.s4 (!%p1028_p9), %v4650_v1  ;;  %v5107_v3 = vshrl.u32 (!%p1028_p9), %v1173_v0, 7  ;;  %vm2490_vm3 = vcmask (!%p1028_p9), 1043456   ;;  %vm2486_vm4 = vcmask (!%p1028_p9), 424960  }
  0x84   : > { %s4336_s18 = smul.u32 (!%p1028_p9), 112, %s5099_s26 }
  0x85   : > { %s5109_s10 = scalar_lea.vmem (!%p1028_p9), [#allocation2], %s4334_s9  ;;  %v1172_v6 = vunpack.c.0.s8 (!%p1028_p9), %v1171_v2  ;;  %s4335_s23 = smul.u32 (!%p1028_p9), 12, %s5099_s26 }
  0x86   : > { %v4365_v4 = vld [vmem:[%s5109_s10 + $0x4] ss:$8 sps:$4 sm:$0xff] (!%p1028_p9)   ;;  %v4367_v7 = vld [vmem:[%s5109_s10 + $0x1d4] ss:$8 sps:$4 sm:$0xff] (!%p1028_p9)   ;;  %v4369_v8 = vld [vmem:[%s5109_s10] ss:$8 sps:$4 sm:$0xff] (!%p1028_p9)  }
  0x87   : > { %1491 = vmatprep.subr.bf16.mxu0 (!%p1028_p9), %v4365_v4  ;;  %v4370_v9 = vld [vmem:[%s5109_s10 + $0x1d0] ss:$8 sps:$4 sm:$0xff] (!%p1028_p9)   ;;  %v5118_v10 = vsub.s32 (!%p1028_p9), %v1172_v6, %v5107_v3  ;;  %1940 = vmatprep.subr.bf16.mxu1 (!%p1028_p9), %v4367_v7  ;;  %v4371_v11 = vld [vmem:[%s5109_s10 + $0x14] ss:$8 sps:$4 sm:$0xff] (!%p1028_p9)   ;;  %v4373_v12 = vld [vmem:[%s5109_s10 + $0x1e4] ss:$8 sps:$4 sm:$0xff] (!%p1028_p9)  }
  0x88   : > { %1492 = vmatpush1.bf16.msra.mxu0 (!%p1028_p9), %v4369_v8  ;;  %1941 = vmatpush1.bf16.msra.mxu1 (!%p1028_p9), %v4370_v9  ;;  %v4375_v13 = vld [vmem:[%s5109_s10 + $0x10] ss:$8 sps:$4 sm:$0xff] (!%p1028_p9)   ;;  %v4376_v15 = vld [vmem:[%s5109_s10 + $0x1e0] ss:$8 sps:$4 sm:$0xff] (!%p1028_p9)   ;;  %v4377_v16 = vld [vmem:[%s5109_s10 + $0x24] ss:$8 sps:$4 sm:$0xff] (!%p1028_p9)  }
  0x89   : > { %v5124_v14 = vrot.slane %v1169_v5, %v5118_v10  ;;  %1493 = vmatprep.subr.bf16.mxu0 %v4371_v11  ;;  %1942 = vmatprep.subr.bf16.mxu1 %v4373_v12  ;;  %v4379_v17 = vld [vmem:[%s5109_s10 + $0x1f4] ss:$8 sps:$4 sm:$0xff]   ;;  %v4381_v18 = vld [vmem:[%s5109_s10 + $0x20] ss:$8 sps:$4 sm:$0xff]   ;;  %v4382_v19 = vld [vmem:[%s5109_s10 + $0x1f0] ss:$8 sps:$4 sm:$0xff]  }
  0x8a   : > { %v4383_v20 = vld [vmem:[%s5109_s10 + $0x34] ss:$8 sps:$4 sm:$0xff]   ;;  %v4385_v21 = vld [vmem:[%s5109_s10 + $0x204] ss:$8 sps:$4 sm:$0xff]   ;;  %v4387_v22 = vld [vmem:[%s5109_s10 + $0x30] ss:$8 sps:$4 sm:$0xff]  }
  0x8b   : > { %1523 = vmatprep.mubr.bf16.mxu0 %v5124_v14  ;;  %1972 = vmatprep.mubr.bf16.mxu1 %v5124_v14  ;;  %v4388_v23 = vld [vmem:[%s5109_s10 + $0x200] ss:$8 sps:$4 sm:$0xff]   ;;  %v4389_v24 = vld [vmem:[%s5109_s10 + $0x44] ss:$8 sps:$4 sm:$0xff]   ;;  %v4391_v25 = vld [vmem:[%s5109_s10 + $0x214] ss:$8 sps:$4 sm:$0xff]  }
  0x8c   : > { %1494 = vmatpush1.bf16.msra.mxu0 %v4375_v13  ;;  %1943 = vmatpush1.bf16.msra.mxu1 %v4376_v15  ;;  %v4393_v26 = vld [vmem:[%s5109_s10 + $0x40] ss:$8 sps:$4 sm:$0xff]   ;;  %v4394_v27 = vld [vmem:[%s5109_s10 + $0x210] ss:$8 sps:$4 sm:$0xff]   ;;  %v4395_v28 = vld [vmem:[%s5109_s10 + $0x54] ss:$8 sps:$4 sm:$0xff]  }
  0x8d   : > { %1495 = vmatprep.subr.bf16.mxu0 %v4377_v16  ;;  %1944 = vmatprep.subr.bf16.mxu1 %v4379_v17  ;;  %v4397_v29 = vld [vmem:[%s5109_s10 + $0x224] ss:$8 sps:$4 sm:$0xff]   ;;  %v4399_v30 = vld [vmem:[%s5109_s10 + $0x50] ss:$8 sps:$4 sm:$0xff]   ;;  %v4400_v31 = vld [vmem:[%s5109_s10 + $0x220] ss:$8 sps:$4 sm:$0xff]   ;;  %v5191_v16 = vrot.slane %v5104_v63, %v5118_v10 }
  0x8e   : > { %v4401_v32 = vld [vmem:[%s5109_s10 + $0x64] ss:$8 sps:$4 sm:$0xff]   ;;  %v4403_v33 = vld [vmem:[%s5109_s10 + $0x234] ss:$8 sps:$4 sm:$0xff]   ;;  %v4405_v34 = vld [vmem:[%s5109_s10 + $0x60] ss:$8 sps:$4 sm:$0xff]  }
  0x8f   : > { %v4406_v35 = vld [vmem:[%s5109_s10 + $0x230] ss:$8 sps:$4 sm:$0xff]   ;;  %v4407_v36 = vld [vmem:[%s5109_s10 + $0x74] ss:$8 sps:$4 sm:$0xff]   ;;  %v4409_v37 = vld [vmem:[%s5109_s10 + $0x244] ss:$8 sps:$4 sm:$0xff]  }
  0x90   : > { %1496 = vmatpush1.bf16.msra.mxu0 %v4381_v18  ;;  %1945 = vmatpush1.bf16.msra.mxu1 %v4382_v19  ;;  %v4411_v38 = vld [vmem:[%s5109_s10 + $0x70] ss:$8 sps:$4 sm:$0xff]   ;;  %v4412_v39 = vld [vmem:[%s5109_s10 + $0x240] ss:$8 sps:$4 sm:$0xff]   ;;  %v4413_v40 = vld [vmem:[%s5109_s10 + $0x84] ss:$8 sps:$4 sm:$0xff]   ;;  %v5197_v19 = vcombine.high %v5124_v14, %v5124_v14 }
  0x91   : > { %1497 = vmatprep.subr.bf16.mxu0 %v4383_v20  ;;  %1946 = vmatprep.subr.bf16.mxu1 %v4385_v21  ;;  %v4415_v41 = vld [vmem:[%s5109_s10 + $0x254] ss:$8 sps:$4 sm:$0xff]   ;;  %v4417_v42 = vld [vmem:[%s5109_s10 + $0x80] ss:$8 sps:$4 sm:$0xff]   ;;  %v4418_v43 = vld [vmem:[%s5109_s10 + $0x250] ss:$8 sps:$4 sm:$0xff]  }
  0x92   : > { %v4419_v44 = vld [vmem:[%s5109_s10 + $0x94] ss:$8 sps:$4 sm:$0xff]   ;;  %v4421_v45 = vld [vmem:[%s5109_s10 + $0x264] ss:$8 sps:$4 sm:$0xff]   ;;  %v4423_v46 = vld [vmem:[%s5109_s10 + $0x90] ss:$8 sps:$4 sm:$0xff]  }
  0x93   : > { %v4424_v47 = vld [vmem:[%s5109_s10 + $0x260] ss:$8 sps:$4 sm:$0xff]   ;;  %v4425_v48 = vld [vmem:[%s5109_s10 + $0xa4] ss:$8 sps:$4 sm:$0xff]   ;;  %v4427_v49 = vld [vmem:[%s5109_s10 + $0x274] ss:$8 sps:$4 sm:$0xff]  }
  0x94   : > { %1498 = vmatpush1.bf16.msra.mxu0 %v4387_v22  ;;  %1947 = vmatpush1.bf16.msra.mxu1 %v4388_v23  ;;  %v4429_v50 = vld [vmem:[%s5109_s10 + $0xa0] ss:$8 sps:$4 sm:$0xff]   ;;  %v4430_v51 = vld [vmem:[%s5109_s10 + $0x270] ss:$8 sps:$4 sm:$0xff]   ;;  %v4431_v52 = vld [vmem:[%s5109_s10 + $0xb4] ss:$8 sps:$4 sm:$0xff]  }
  0x95   : > { %1499 = vmatprep.subr.bf16.mxu0 %v4389_v24  ;;  %1948 = vmatprep.subr.bf16.mxu1 %v4391_v25  ;;  %v4433_v53 = vld [vmem:[%s5109_s10 + $0x284] ss:$8 sps:$4 sm:$0xff]   ;;  %v4435_v54 = vld [vmem:[%s5109_s10 + $0xb0] ss:$8 sps:$4 sm:$0xff]   ;;  %v4436_v55 = vld [vmem:[%s5109_s10 + $0x280] ss:$8 sps:$4 sm:$0xff]  }
  0x96   : > { %v4437_v56 = vld [vmem:[%s5109_s10 + $0xc4] ss:$8 sps:$4 sm:$0xff]   ;;  %v4439_v57 = vld [vmem:[%s5109_s10 + $0x294] ss:$8 sps:$4 sm:$0xff]   ;;  %v4441_v58 = vld [vmem:[%s5109_s10 + $0xc0] ss:$8 sps:$4 sm:$0xff]  }
  0x97   : > { %v4442_v59 = vld [vmem:[%s5109_s10 + $0x290] ss:$8 sps:$4 sm:$0xff]   ;;  %v4443_v60 = vld [vmem:[%s5109_s10 + $0xd4] ss:$8 sps:$4 sm:$0xff]   ;;  %v4445_v61 = vld [vmem:[%s5109_s10 + $0x2a4] ss:$8 sps:$4 sm:$0xff]  }
  0x98   : > { %1500 = vmatpush1.bf16.msra.mxu0 %v4393_v26  ;;  %1949 = vmatpush1.bf16.msra.mxu1 %v4394_v27  ;;  %v4447_v62 = vld [vmem:[%s5109_s10 + $0xd0] ss:$8 sps:$4 sm:$0xff]   ;;  %v4448_v0 = vld [vmem:[%s5109_s10 + $0x2a0] ss:$8 sps:$4 sm:$0xff]   ;;  %v4449_v1 = vld [vmem:[%s5109_s10 + $0xe4] ss:$8 sps:$4 sm:$0xff]  }
  0x99   : > { %1501 = vmatprep.subr.bf16.mxu0 %v4395_v28  ;;  %1950 = vmatprep.subr.bf16.mxu1 %v4397_v29  ;;  %v4451_v2 = vld [vmem:[%s5109_s10 + $0x2b4] ss:$8 sps:$4 sm:$0xff]   ;;  %v4453_v4 = vld [vmem:[%s5109_s10 + $0xe0] ss:$8 sps:$4 sm:$0xff]   ;;  %v4454_v5 = vld [vmem:[%s5109_s10 + $0x2b0] ss:$8 sps:$4 sm:$0xff]  }
  0x9a   : > { %v4455_v6 = vld [vmem:[%s5109_s10 + $0xf4] ss:$8 sps:$4 sm:$0xff]   ;;  %v4457_v7 = vld [vmem:[%s5109_s10 + $0x2c4] ss:$8 sps:$4 sm:$0xff]   ;;  %v4459_v8 = vld [vmem:[%s5109_s10 + $0xf0] ss:$8 sps:$4 sm:$0xff]  }
  0x9b   : > { %v4460_v9 = vld [vmem:[%s5109_s10 + $0x2c0] ss:$8 sps:$4 sm:$0xff]   ;;  %v4463_v11 = vld [vmem:[%s5109_s10 + $0x104] ss:$8 sps:$4 sm:$0xff]   ;;  %v4466_v12 = vld [vmem:[%s5109_s10 + $0x2d4] ss:$8 sps:$4 sm:$0xff]  }
  0x9c   : > { %1502 = vmatpush1.bf16.msra.mxu0 %v4399_v30  ;;  %1951 = vmatpush1.bf16.msra.mxu1 %v4400_v31  ;;  %v4461_v13 = vld [vmem:[%s5109_s10 + $0x100] ss:$8 sps:$4 sm:$0xff]   ;;  %v4464_v15 = vld [vmem:[%s5109_s10 + $0x2d0] ss:$8 sps:$4 sm:$0xff]   ;;  %v4469_v17 = vld [vmem:[%s5109_s10 + $0x114] ss:$8 sps:$4 sm:$0xff]  }
  0x9d   : > { %1503 = vmatprep.subr.bf16.mxu0 %v4401_v32  ;;  %1952 = vmatprep.subr.bf16.mxu1 %v4403_v33  ;;  %v4472_v18 = vld [vmem:[%s5109_s10 + $0x2e4] ss:$8 sps:$4 sm:$0xff]   ;;  %v4467_v63 = vld [vmem:[%s5109_s10 + $0x110] ss:$8 sps:$4 sm:$0xff]   ;;  %v4470_v10 = vld [vmem:[%s5109_s10 + $0x2e0] ss:$8 sps:$4 sm:$0xff]  }
  0x9e   : > { %v4475_v20 = vld [vmem:[%s5109_s10 + $0x124] ss:$8 sps:$4 sm:$0xff]   ;;  %v4478_v21 = vld [vmem:[%s5109_s10 + $0x2f4] ss:$8 sps:$4 sm:$0xff]   ;;  %v4473_v22 = vld [vmem:[%s5109_s10 + $0x120] ss:$8 sps:$4 sm:$0xff]  }
  0x9f   : > { %v4476_v23 = vld [vmem:[%s5109_s10 + $0x2f0] ss:$8 sps:$4 sm:$0xff]   ;;  %v4481_v24 = vld [vmem:[%s5109_s10 + $0x134] ss:$8 sps:$4 sm:$0xff]   ;;  %v4484_v25 = vld [vmem:[%s5109_s10 + $0x304] ss:$8 sps:$4 sm:$0xff]  }
  0xa0   : > { %1504 = vmatpush1.bf16.msra.mxu0 %v4405_v34  ;;  %1953 = vmatpush1.bf16.msra.mxu1 %v4406_v35  ;;  %v4479_v26 = vld [vmem:[%s5109_s10 + $0x130] ss:$8 sps:$4 sm:$0xff]   ;;  %v4482_v27 = vld [vmem:[%s5109_s10 + $0x300] ss:$8 sps:$4 sm:$0xff]   ;;  %v4487_v28 = vld [vmem:[%s5109_s10 + $0x144] ss:$8 sps:$4 sm:$0xff]  }
  0xa1   : > { %1505 = vmatprep.subr.bf16.mxu0 %v4407_v36  ;;  %1954 = vmatprep.subr.bf16.mxu1 %v4409_v37  ;;  %v4490_v29 = vld [vmem:[%s5109_s10 + $0x314] ss:$8 sps:$4 sm:$0xff]   ;;  %v4485_v30 = vld [vmem:[%s5109_s10 + $0x140] ss:$8 sps:$4 sm:$0xff]   ;;  %v4488_v31 = vld [vmem:[%s5109_s10 + $0x310] ss:$8 sps:$4 sm:$0xff]  }
  0xa2   : > { %v4493_v32 = vld [vmem:[%s5109_s10 + $0x154] ss:$8 sps:$4 sm:$0xff]   ;;  %v4496_v33 = vld [vmem:[%s5109_s10 + $0x324] ss:$8 sps:$4 sm:$0xff]   ;;  %v4491_v34 = vld [vmem:[%s5109_s10 + $0x150] ss:$8 sps:$4 sm:$0xff]  }
  0xa3   : > { %v4494_v35 = vld [vmem:[%s5109_s10 + $0x320] ss:$8 sps:$4 sm:$0xff]   ;;  %v4499_v36 = vld [vmem:[%s5109_s10 + $0x164] ss:$8 sps:$4 sm:$0xff]   ;;  %v4502_v37 = vld [vmem:[%s5109_s10 + $0x334] ss:$8 sps:$4 sm:$0xff]  }
  0xa4   : > { %1506 = vmatpush1.bf16.msra.mxu0 %v4411_v38  ;;  %1955 = vmatpush1.bf16.msra.mxu1 %v4412_v39  ;;  %v4497_v38 = vld [vmem:[%s5109_s10 + $0x160] ss:$8 sps:$4 sm:$0xff]   ;;  %v4500_v39 = vld [vmem:[%s5109_s10 + $0x330] ss:$8 sps:$4 sm:$0xff]   ;;  %s5256_s11 = scalar_lea.vmem [#allocation4], %s4336_s18  ;;  %s5549_s24 = scalar_lea.vmem [#allocation3], %s4335_s23 }
  0xa5   : > { %1507 = vmatprep.subr.bf16.mxu0 %v4413_v40  ;;  %1956 = vmatprep.subr.bf16.mxu1 %v4415_v41  ;;  %v4505_v40 = vld [vmem:[%s5109_s10 + $0x174] ss:$8 sps:$4 sm:$0xff]   ;;  %v4508_v41 = vld [vmem:[%s5109_s10 + $0x344] ss:$8 sps:$4 sm:$0xff]   ;;  %s5579_s28 = scalar_lea.vmem [#allocation5], %s4335_s23  ;;  %s4174_s26 = sshll.u32 (%p4718_p5), %s3808_s21, 2 }
  0xa6   : > { %s3668_s6 = scalar_lea.vmem (%p4718_p5), %s5615_s5, %s4174_s26 }
  0xa8   : > { %1508 = vmatpush1.bf16.msra.mxu0 %v4417_v42  ;;  %1957 = vmatpush1.bf16.msra.mxu1 %v4418_v43  ;;  %v4503_v42 = vld [vmem:[%s5109_s10 + $0x170] ss:$8 sps:$4 sm:$0xff]   ;;  %v4506_v43 = vld [vmem:[%s5109_s10 + $0x340] ss:$8 sps:$4 sm:$0xff]  }
  0xa9   : > { %1509 = vmatprep.subr.bf16.mxu0 %v4419_v44  ;;  %1958 = vmatprep.subr.bf16.mxu1 %v4421_v45  ;;  %v4511_v44 = vld [vmem:[%s5109_s10 + $0x184] ss:$8 sps:$4 sm:$0xff]   ;;  %v4514_v45 = vld [vmem:[%s5109_s10 + $0x354] ss:$8 sps:$4 sm:$0xff]  }
  0xac   : > { %1510 = vmatpush1.bf16.msra.mxu0 %v4423_v46  ;;  %1959 = vmatpush1.bf16.msra.mxu1 %v4424_v47  ;;  %v4509_v46 = vld [vmem:[%s5109_s10 + $0x180] ss:$8 sps:$4 sm:$0xff]   ;;  %v4512_v47 = vld [vmem:[%s5109_s10 + $0x350] ss:$8 sps:$4 sm:$0xff]  }
  0xad   : > { %1511 = vmatprep.subr.bf16.mxu0 %v4425_v48  ;;  %1960 = vmatprep.subr.bf16.mxu1 %v4427_v49  ;;  %v4517_v48 = vld [vmem:[%s5109_s10 + $0x194] ss:$8 sps:$4 sm:$0xff]   ;;  %v4520_v49 = vld [vmem:[%s5109_s10 + $0x364] ss:$8 sps:$4 sm:$0xff]  }
  0xb0   : > { %1512 = vmatpush1.bf16.msra.mxu0 %v4429_v50  ;;  %1961 = vmatpush1.bf16.msra.mxu1 %v4430_v51  ;;  %v4515_v50 = vld [vmem:[%s5109_s10 + $0x190] ss:$8 sps:$4 sm:$0xff]   ;;  %v4518_v51 = vld [vmem:[%s5109_s10 + $0x360] ss:$8 sps:$4 sm:$0xff]  }
  0xb1   : > { %1513 = vmatprep.subr.bf16.mxu0 %v4431_v52  ;;  %1962 = vmatprep.subr.bf16.mxu1 %v4433_v53  ;;  %v4523_v52 = vld [vmem:[%s5109_s10 + $0x1a4] ss:$8 sps:$4 sm:$0xff]   ;;  %v4526_v53 = vld [vmem:[%s5109_s10 + $0x374] ss:$8 sps:$4 sm:$0xff]  }
  0xb4   : > { %1514 = vmatpush1.bf16.msra.mxu0 %v4435_v54  ;;  %1963 = vmatpush1.bf16.msra.mxu1 %v4436_v55  ;;  %v4521_v54 = vld [vmem:[%s5109_s10 + $0x1a0] ss:$8 sps:$4 sm:$0xff]   ;;  %v4524_v55 = vld [vmem:[%s5109_s10 + $0x370] ss:$8 sps:$4 sm:$0xff]  }
  0xb5   : > { %1515 = vmatprep.subr.bf16.mxu0 %v4437_v56  ;;  %1964 = vmatprep.subr.bf16.mxu1 %v4439_v57  ;;  %v4529_v56 = vld [vmem:[%s5109_s10 + $0x1b4] ss:$8 sps:$4 sm:$0xff]   ;;  %v4651_v57 = vmov 65535  }
  0xb8   : > { %1516 = vmatpush1.bf16.msra.mxu0 %v4441_v58  ;;  %1965 = vmatpush1.bf16.msra.mxu1 %v4442_v59  ;;  %v1483_v58 = vsel %vm1481_vm1, 4294967295, %v4651_v57  ;;  %v4532_v59 = vld [vmem:[%s5109_s10 + $0x384] ss:$8 sps:$4 sm:$0xff]   ;;  %v4574_v57 = vld [vmem:[%s5109_s10 + $0x454] ss:$8 sps:$4 sm:$0xff]  }
  0xb9   : > { %1517 = vmatprep.subr.bf16.mxu0 %v4443_v60  ;;  %1966 = vmatprep.subr.bf16.mxu1 %v4445_v61  ;;  %v4535_v60 = vld [vmem:[%s5109_s10 + $0x1c4] ss:$8 sps:$4 sm:$0x3f]   ;;  %v4538_v61 = vld [vmem:[%s5109_s10 + $0x394] ss:$8 sps:$4 sm:$0x3f]  }
  0xbc   : > { %1518 = vmatpush1.bf16.msra.mxu0 %v4447_v62  ;;  %1967 = vmatpush1.bf16.msra.mxu1 %v4448_v0  ;;  %v4527_v62 = vld [vmem:[%s5109_s10 + $0x1b0] ss:$8 sps:$4 sm:$0xff]   ;;  %v5249_v0 = vsel %vm1482_vm2, %v1483_v58, 0 }
  0xbd   : > { %1519 = vmatprep.subr.bf16.mxu0 %v4449_v1  ;;  %1968 = vmatprep.subr.bf16.mxu1 %v4451_v2  ;;  %v4530_v1 = vld [vmem:[%s5109_s10 + $0x380] ss:$8 sps:$4 sm:$0xff]   ;;  %v4572_v58 = vld [vmem:[%s5109_s10 + $0x450] ss:$8 sps:$4 sm:$0xff]  }
  0xbe   : > { %v4533_v2 = vld [vmem:[%s5109_s10 + $0x1c0] ss:$8 sps:$4 sm:$0x3f]  }
  0xc0   : > { %1520 = vmatpush1.bf16.msra.mxu0 %v4453_v4  ;;  %1969 = vmatpush1.bf16.msra.mxu1 %v4454_v5  ;;  %v4536_v4 = vld [vmem:[%s5109_s10 + $0x390] ss:$8 sps:$4 sm:$0x3f]   ;;  %v1489_v5 = vand.u32 %v4535_v60, %v5249_v0  ;;  %v4575_v60 = vld [vmem:[%s5109_s10 + $0x460] ss:$8 sps:$4 sm:$0xff]  }
  0xc1   : > { %1521 = vmatprep.subr.bf16.mxu0 %v4455_v6  ;;  %1970 = vmatprep.subr.bf16.mxu1 %v4457_v7  ;;  %v1938_v6 = vand.u32 %v4538_v61, %v5249_v0  ;;  %v1089_v7 = vld [vmem:[%s5256_s11 + $0x8] sm:$0xff]  ;;  %v4580_v61 = vld [vmem:[%s5109_s10 + $0x474] ss:$8 sps:$4 sm:$0xff]  }
  0xc4   : > { %1522 = vmatpush1.bf16.msra.mxu0 %v4459_v8  ;;  %1971 = vmatpush1.bf16.msra.mxu1 %v4460_v9  ;;  %v1091_v8 = vld [vmem:[%s5256_s11 + $0x18] sm:$0xff]  ;;  %v1486_v9 = vand.u32 %v4533_v2, %v5249_v0  ;;  %v4581_v2 = vld [vmem:[%s5109_s10 + $0x480] ss:$8 sps:$4 sm:$0xff]  }
  0xc5   : > { %1532 = vmatprep.subr.bf16.mxu0 %v4463_v11  ;;  %1981 = vmatprep.subr.bf16.mxu1 %v4466_v12  ;;  %v1935_v11 = vand.u32 %v4536_v4, %v5249_v0  ;;  %v4541_v12 = vld [vmem:[%s5109_s10 + $0x3a4] ss:$8 sps:$4 sm:$0xff]  }
  0xc6   : > { %v4126_v4 = vld [vmem:[%s5613_s3 + $0x4] sm:$0x3] }
  0xc7   : > { %1524 = vmatmul.mubr.bf16.vlgmr.msra.gmra.mrb[0].mxu0 %v5191_v16  ;;  %1973 = vmatmul.mubr.bf16.vlgmr.msra.gmra.mrb[0].mxu1 %v5191_v16 }
  0xc8   : > { %1533 = vmatpush1.bf16.msra.mxu0 %v4461_v13  ;;  %1982 = vmatpush1.bf16.msra.mxu1 %v4464_v15  ;;  %v5263_v13 = vpack.c.bf16 %v1091_v8, %v1089_v7  ;;  %v1088_v15 = vld [vmem:[%s5256_s11] sm:$0xff]  ;;  %v4589_v7 = vld [vmem:[%s5109_s10 + $0x4a4] ss:$8 sps:$4 sm:$0xff]   ;;  %v4587_v8 = vld [vmem:[%s5109_s10 + $0x4a0] ss:$8 sps:$4 sm:$0xff]  }
  0xc9   : > { %1534 = vmatprep.subr.bf16.mxu0 %v4469_v17  ;;  %1983 = vmatprep.subr.bf16.mxu1 %v4472_v18  ;;  %v1090_v17 = vld [vmem:[%s5256_s11 + $0x10] sm:$0xff]  ;;  %v1093_v18 = vld [vmem:[%s5256_s11 + $0x28] sm:$0xff] }
  0xca   : > { %3878 = vmatprep.mubr.msk.bf16.mxu0 %vm1477_vm0, %v5197_v19  ;;  %3996 = vmatprep.mubr.msk.bf16.mxu1 %vm1477_vm0, %v5197_v19 }
  0xcc   : > { %1535 = vmatpush1.bf16.msra.mxu0 %v4467_v63  ;;  %1984 = vmatpush1.bf16.msra.mxu1 %v4470_v10  ;;  %v1095_v63 = vld [vmem:[%s5256_s11 + $0x38] sm:$0xff]  ;;  %v5271_v10 = vcombine.high %v5191_v16, %v5191_v16 }
  0xcd   : > { %1536 = vmatprep.subr.bf16.mxu0 %v4475_v20  ;;  %1985 = vmatprep.subr.bf16.mxu1 %v4478_v21  ;;  %v4539_v20 = vld [vmem:[%s5109_s10 + $0x3a0] ss:$8 sps:$4 sm:$0xff]   ;;  %v5274_v21 = vpack.c.bf16 %v1090_v17, %v1088_v15  ;;  %v4595_v15 = vld [vmem:[%s5109_s10 + $0x4c4] ss:$8 sps:$4 sm:$0xff]   ;;  %v4598_v17 = vld [vmem:[%s5109_s10 + $0x4d4] ss:$8 sps:$4 sm:$0xff]  }
  0xd0   : > { %1537 = vmatpush1.bf16.msra.mxu0 %v4473_v22  ;;  %1986 = vmatpush1.bf16.msra.mxu1 %v4476_v23  ;;  %v4544_v22 = vld [vmem:[%s5109_s10 + $0x3b4] ss:$8 sps:$4 sm:$0xff]   ;;  %v5278_v23 = vpack.c.bf16 %v1095_v63, %v1093_v18  ;;  %v4601_v18 = vld [vmem:[%s5109_s10 + $0x4e4] ss:$8 sps:$4 sm:$0xff]   ;;  %v4599_v63 = vld [vmem:[%s5109_s10 + $0x4e0] ss:$8 sps:$4 sm:$0xff]  }
  0xd1   : > { %1538 = vmatprep.subr.bf16.mxu0 %v4481_v24  ;;  %1987 = vmatprep.subr.bf16.mxu1 %v4484_v25  ;;  %v1092_v24 = vld [vmem:[%s5256_s11 + $0x20] sm:$0xff]  ;;  %v1094_v25 = vld [vmem:[%s5256_s11 + $0x30] sm:$0xff] }
  0xd4   : > { %1539 = vmatpush1.bf16.msra.mxu0 %v4479_v26  ;;  %1988 = vmatpush1.bf16.msra.mxu1 %v4482_v27  ;;  %v1097_v26 = vld [vmem:[%s5256_s11 + $0x48] sm:$0xff]  ;;  %v1099_v27 = vld [vmem:[%s5256_s11 + $0x58] sm:$0xff] }
  0xd5   : > { %1540 = vmatprep.subr.bf16.mxu0 %v4487_v28  ;;  %1989 = vmatprep.subr.bf16.mxu1 %v4490_v29  ;;  %v4542_v28 = vld [vmem:[%s5109_s10 + $0x3b0] ss:$8 sps:$4 sm:$0xff]   ;;  %v5288_v29 = vpack.c.bf16 %v1094_v25, %v1092_v24  ;;  %v4131_v24 = vld [vmem:[%s5613_s3 + $0xe] sm:$0x3] }
  0xd6   : > { %v4607_v25 = vld [vmem:[%s5109_s10 + $0x504] ss:$8 sps:$4 sm:$0xff]  }
  0xd8   : > { %1541 = vmatpush1.bf16.msra.mxu0 %v4485_v30  ;;  %1990 = vmatpush1.bf16.msra.mxu1 %v4488_v31  ;;  %v4547_v30 = vld [vmem:[%s5109_s10 + $0x3c4] ss:$8 sps:$4 sm:$0xff]   ;;  %v5292_v31 = vpack.c.bf16 %v1099_v27, %v1097_v26  ;;  %v4605_v26 = vld [vmem:[%s5109_s10 + $0x500] ss:$8 sps:$4 sm:$0xff]   ;;  %v4610_v27 = vld [vmem:[%s5109_s10 + $0x514] ss:$8 sps:$4 sm:$0xff]  }
  0xd9   : > { %1542 = vmatprep.subr.bf16.mxu0 %v4493_v32  ;;  %1991 = vmatprep.subr.bf16.mxu1 %v4496_v33  ;;  %v1096_v32 = vld [vmem:[%s5256_s11 + $0x40] sm:$0xff]  ;;  %v1098_v33 = vld [vmem:[%s5256_s11 + $0x50] sm:$0xff] }
  0xdc   : > { %1543 = vmatpush1.bf16.msra.mxu0 %v4491_v34  ;;  %1992 = vmatpush1.bf16.msra.mxu1 %v4494_v35  ;;  %v4652_v34 = vmov 0.0   ;;  %v4545_v35 = vld [vmem:[%s5109_s10 + $0x3c0] ss:$8 sps:$4 sm:$0xff]  }
  0xdd   : > { %1544 = vmatprep.subr.bf16.mxu0 %v4499_v36  ;;  %1993 = vmatprep.subr.bf16.mxu1 %v4502_v37  ;;  %v5300_v36 = vpack.c.bf16 %v1098_v33, %v1096_v32  ;;  %v4550_v37 = vld [vmem:[%s5109_s10 + $0x3d4] ss:$8 sps:$4 sm:$0xff]   ;;  %v4611_v32 = vld [vmem:[%s5109_s10 + $0x520] ss:$8 sps:$4 sm:$0xff]  }
  0xde   : > { %v4139_v33 = vld [vmem:[%s5613_s3 + $0xa] sm:$0x3] }
  0xe0   : > { %1545 = vmatpush1.bf16.msra.mxu0 %v4497_v38  ;;  %1994 = vmatpush1.bf16.msra.mxu1 %v4500_v39  ;;  %v5305_v38 = vld [vmem:[%s5256_s11 + $0x68] sm:$0xf]  ;;  %v5312_v39 = vld [vmem:[%s5256_s11 + $0x60] sm:$0xf] }
  0xe1   : > { %1546 = vmatprep.subr.bf16.mxu0 %v4505_v40  ;;  %1995 = vmatprep.subr.bf16.mxu1 %v4508_v41  ;;  %v2485_v40 = vld [vmem:[%s5613_s3] sm:$0x3]  ;;  %v4553_v41 = vld [vmem:[%s5109_s10 + $0x3e4] ss:$8 sps:$4 sm:$0xff]  }
  0xe4   : > { %1547 = vmatpush1.bf16.msra.mxu0 %v4503_v42  ;;  %1996 = vmatpush1.bf16.msra.mxu1 %v4506_v43  ;;  %v4551_v42 = vld [vmem:[%s5109_s10 + $0x3e0] ss:$8 sps:$4 sm:$0xff]   ;;  %v4556_v43 = vld [vmem:[%s5109_s10 + $0x3f4] ss:$8 sps:$4 sm:$0xff]  }
  0xe5   : > { %1548 = vmatprep.subr.bf16.mxu0 %v4511_v44  ;;  %1997 = vmatprep.subr.bf16.mxu1 %v4514_v45  ;;  %v4554_v44 = vld [vmem:[%s5109_s10 + $0x3f0] ss:$8 sps:$4 sm:$0xff]   ;;  %v4559_v45 = vld [vmem:[%s5109_s10 + $0x404] ss:$8 sps:$4 sm:$0xff]  }
  0xe8   : > { %1549 = vmatpush1.bf16.msra.mxu0 %v4509_v46  ;;  %1998 = vmatpush1.bf16.msra.mxu1 %v4512_v47  ;;  %v4557_v46 = vld [vmem:[%s5109_s10 + $0x400] ss:$8 sps:$4 sm:$0xff]   ;;  %v4562_v47 = vld [vmem:[%s5109_s10 + $0x414] ss:$8 sps:$4 sm:$0xff]  }
  0xe9   : > { %1550 = vmatprep.subr.bf16.mxu0 %v4517_v48  ;;  %1999 = vmatprep.subr.bf16.mxu1 %v4520_v49  ;;  %v4560_v48 = vld [vmem:[%s5109_s10 + $0x410] ss:$8 sps:$4 sm:$0xff]   ;;  %v4115_v49 = vld [vmem:[%s5613_s3 + $0x6] sm:$0x3] }
  0xec   : > { %1551 = vmatpush1.bf16.msra.mxu0 %v4515_v50  ;;  %2000 = vmatpush1.bf16.msra.mxu1 %v4518_v51  ;;  %v4565_v50 = vld [vmem:[%s5109_s10 + $0x424] ss:$8 sps:$4 sm:$0xff]   ;;  %v4563_v51 = vld [vmem:[%s5109_s10 + $0x420] ss:$8 sps:$4 sm:$0xff]  }
  0xed   : > { %1552 = vmatprep.subr.bf16.mxu0 %v4523_v52  ;;  %2001 = vmatprep.subr.bf16.mxu1 %v4526_v53  ;;  %v4568_v52 = vld [vmem:[%s5109_s10 + $0x434] ss:$8 sps:$4 sm:$0xff]   ;;  %v4566_v53 = vld [vmem:[%s5109_s10 + $0x430] ss:$8 sps:$4 sm:$0xff]  }
  0xf0   : > { %1553 = vmatpush1.bf16.msra.mxu0 %v4521_v54  ;;  %2002 = vmatpush1.bf16.msra.mxu1 %v4524_v55  ;;  %v4571_v54 = vld [vmem:[%s5109_s10 + $0x444] ss:$8 sps:$4 sm:$0xff]   ;;  %v4569_v55 = vld [vmem:[%s5109_s10 + $0x440] ss:$8 sps:$4 sm:$0xff]  }
  0xf1   : > { %1554 = vmatprep.subr.bf16.mxu0 %v4529_v56  ;;  %2003 = vmatprep.subr.bf16.mxu1 %v4532_v59  ;;  %v4122_v56 = vld [vmem:[%s5613_s3 + $0x2] sm:$0x3]  ;;  %v4577_v59 = vld [vmem:[%s5109_s10 + $0x464] ss:$8 sps:$4 sm:$0xff]  }
  0xf4   : > { %1555 = vmatpush1.bf16.msra.mxu0 %v4527_v62  ;;  %2004 = vmatpush1.bf16.msra.mxu1 %v4530_v1  ;;  %v4578_v62 = vld [vmem:[%s5109_s10 + $0x470] ss:$8 sps:$4 sm:$0xff]   ;;  %v4583_v1 = vld [vmem:[%s5109_s10 + $0x484] ss:$8 sps:$4 sm:$0xff]  }
  0xf5   : > { %1556 = vmatprep.subr.bf16.mxu0 %v1489_v5  ;;  %2005 = vmatprep.subr.bf16.mxu1 %v1938_v6  ;;  %v4586_v5 = vld [vmem:[%s5109_s10 + $0x494] ss:$8 sps:$4 sm:$0xff]   ;;  %v4584_v6 = vld [vmem:[%s5109_s10 + $0x490] ss:$8 sps:$4 sm:$0xff]  }
  0xf8   : > { %1557 = vmatpush1.bf16.msra.mxu0 %v1486_v9  ;;  %2006 = vmatpush1.bf16.msra.mxu1 %v1935_v11  ;;  %v4592_v9 = vld [vmem:[%s5109_s10 + $0x4b4] ss:$8 sps:$4 sm:$0xff]   ;;  %v4590_v11 = vld [vmem:[%s5109_s10 + $0x4b0] ss:$8 sps:$4 sm:$0xff]  }
  0xf9   : > { %2389 = vmatprep.subr.bf16.mxu0 %v4541_v12  ;;  %4176 = vmatprep.subr.bf16.mxu1 %v5263_v13  ;;  %v4132_v12 = vld [vmem:[%s5613_s3 + $0x8] sm:$0x3] }
  0xfb   : > { %1565 = vmatmul.mubr.bf16.vlgmr.msra.gmra.mrb[0].mxu0 %v5271_v10  ;;  %2014 = vmatmul.mubr.bf16.vlgmr.msra.gmra.mrb[0].mxu1 %v5271_v10 }
  0xfc   : > { %2390 = vmatpush1.bf16.msra.mxu0 %v4539_v20  ;;  %4178 = vmatpush1.bf16.msra.mxu1 %v5274_v21  ;;  %v4604_v20 = vld [vmem:[%s5109_s10 + $0x4f4] ss:$8 sps:$4 sm:$0xff]  }
  0xfd   : > { %2391 = vmatprep.subr.bf16.mxu0 %v4544_v22  ;;  %4180 = vmatprep.subr.bf16.mxu1 %v5278_v23  ;;  %v4602_v22 = vld [vmem:[%s5109_s10 + $0x4f0] ss:$8 sps:$4 sm:$0xff]  }
  0xfe   : > { %2561 = vmatprep.mubr.f32.mxu1 %v4652_v34  ;;  %2421 = vmatprep.mubr.bf16.mxu0 %v5124_v14  ;;  %v4548_v14 = vld [vmem:[%s5109_s10 + $0x3d0] ss:$8 sps:$4 sm:$0xff]  }
 0x100   : > { %2392 = vmatpush1.bf16.msra.mxu0 %v4542_v28  ;;  %4182 = vmatpush1.bf16.msra.mxu1 %v5288_v29  ;;  %v4608_v28 = vld [vmem:[%s5109_s10 + $0x510] ss:$8 sps:$4 sm:$0xff]  }
 0x101   : > { %2393 = vmatprep.subr.bf16.mxu0 %v4547_v30  ;;  %4184 = vmatprep.subr.bf16.mxu1 %v5292_v31  ;;  %v4613_v30 = vld [vmem:[%s5109_s10 + $0x524] ss:$8 sps:$4 sm:$0xff]  }
 0x104   : > { %2394 = vmatpush1.bf16.msra.mxu0 %v4545_v35  ;;  %4186 = vmatpush1.bf16.msra.mxu1 %v5300_v36  ;;  %v4616_v35 = vld [vmem:[%s5109_s10 + $0x534] ss:$8 sps:$4 sm:$0xff]  }
 0x105   : > { %2395 = vmatprep.subr.bf16.mxu0 %v4550_v37  ;;  %4116 = vmatprep.subr.msk.mxu1 %vm2490_vm3, %v5305_v38  ;;  %v4614_v37 = vld [vmem:[%s5109_s10 + $0x530] ss:$8 sps:$4 sm:$0xff]  }
 0x108   : > { %2396 = vmatpush1.bf16.msra.mxu0 %v4548_v14  ;;  %4117 = vmatpush1.msk.msra.mxu1 %vm2490_vm3, %v5312_v39  ;;  %v4619_v14 = vld [vmem:[%s5109_s10 + $0x544] ss:$8 sps:$4 sm:$0xff]  }
 0x109   : > { %4118 = vmatmul.mubr.msk.f32.vlgmr.msra.gmra.mrb[4].mxu1 %vm2486_vm4, %v2485_v40  ;;  %4188 = vmatprep.subr.bf16.mxu1 %v5263_v13  ;;  %v4617_v40 = vld [vmem:[%s5109_s10 + $0x540] ss:$8 sps:$4 sm:$0xff]  }
 0x10a   : > { %4190 = vmatpush1.bf16.msra.mxu1 %v5274_v21  ;;  %2397 = vmatprep.subr.bf16.mxu0 %v4553_v41  ;;  %v4622_v41 = vld [vmem:[%s5109_s10 + $0x554] ss:$8 sps:$4 sm:$0xff]  }
 0x10b   : > { %4192 = vmatprep.subr.bf16.mxu1 %v5278_v23  ;;  %2658 = vmatprep.mubr.f32.mxu1 %v4652_v34 }
 0x10c   : > { %2398 = vmatpush1.bf16.msra.mxu0 %v4551_v42  ;;  %v4625_v42 = vld [vmem:[%s5109_s10 + $0x564] ss:$8 sps:$4 sm:$0x3f]  }
 0x10d   : > { %2399 = vmatprep.subr.bf16.mxu0 %v4556_v43  ;;  %v4620_v43 = vld [vmem:[%s5109_s10 + $0x550] ss:$8 sps:$4 sm:$0xff]  }
 0x10e   : > { %4194 = vmatpush1.bf16.msra.mxu1 %v5288_v29 }
 0x10f   : > { %4196 = vmatprep.subr.bf16.mxu1 %v5292_v31 }
 0x110   : > { %2400 = vmatpush1.bf16.msra.mxu0 %v4554_v44  ;;  %v4623_v44 = vld [vmem:[%s5109_s10 + $0x560] ss:$8 sps:$4 sm:$0x3f]  }
 0x111   : > { %2401 = vmatprep.subr.bf16.mxu0 %v4559_v45  ;;  %v2387_v45 = vand.u32 %v4625_v42, %v5249_v0 }
 0x112   : > { %4198 = vmatpush1.bf16.msra.mxu1 %v5300_v36 }
 0x113   : > { %4119 = vmatprep.subr.msk.mxu1 %vm2490_vm3, %v5305_v38 }
 0x114   : > { %2402 = vmatpush1.bf16.msra.mxu0 %v4557_v46  ;;  %v2384_v46 = vand.u32 %v4623_v44, %v5249_v0  ;;  %v4149_v0 = vld [vmem:[%s5613_s3 + $0x10] sm:$0x3] }
 0x115   : > { %2403 = vmatprep.subr.bf16.mxu0 %v4562_v47  ;;  %v4143_v47 = vld [vmem:[%s5613_s3 + $0xc] sm:$0x3] }
 0x116   : > { %4120 = vmatpush1.msk.msra.mxu1 %vm2490_vm3, %v5312_v39 }
 0x117   : > { %4121 = vmatmul.mubr.msk.f32.vlgmr.msra.gmra.mrb[6].mxu1 %vm2486_vm4, %v4115_v49  ;;  %4200 = vmatprep.subr.bf16.mxu1 %v5263_v13 }
 0x118   : > { %2404 = vmatpush1.bf16.msra.mxu0 %v4560_v48  ;;  %4202 = vmatpush1.bf16.msra.mxu1 %v5274_v21 }
 0x119   : > { %2405 = vmatprep.subr.bf16.mxu0 %v4565_v50  ;;  %4204 = vmatprep.subr.bf16.mxu1 %v5278_v23 }
 0x11a   : > { %2734 = vmatprep.mubr.f32.mxu1 %v4652_v34 }
 0x11c   : > { %2406 = vmatpush1.bf16.msra.mxu0 %v4563_v51  ;;  %4206 = vmatpush1.bf16.msra.mxu1 %v5288_v29 }
 0x11d   : > { %2407 = vmatprep.subr.bf16.mxu0 %v4568_v52  ;;  %4208 = vmatprep.subr.bf16.mxu1 %v5292_v31 }
 0x120   : > { %2408 = vmatpush1.bf16.msra.mxu0 %v4566_v53  ;;  %4210 = vmatpush1.bf16.msra.mxu1 %v5300_v36 }
 0x121   : > { %2409 = vmatprep.subr.bf16.mxu0 %v4571_v54  ;;  %4123 = vmatprep.subr.msk.mxu1 %vm2490_vm3, %v5305_v38 }
 0x124   : > { %2410 = vmatpush1.bf16.msra.mxu0 %v4569_v55  ;;  %4124 = vmatpush1.msk.msra.mxu1 %vm2490_vm3, %v5312_v39 }
 0x125   : > { %4125 = vmatmul.mubr.msk.f32.vlgmr.msra.gmra.mrb[8].mxu1 %vm2486_vm4, %v4122_v56  ;;  %4212 = vmatprep.subr.bf16.mxu1 %v5263_v13 }
 0x126   : > { %4214 = vmatpush1.bf16.msra.mxu1 %v5274_v21  ;;  %2411 = vmatprep.subr.bf16.mxu0 %v4574_v57 }
 0x127   : > { %4216 = vmatprep.subr.bf16.mxu1 %v5278_v23  ;;  %2835 = vmatprep.mubr.f32.mxu1 %v4652_v34 }
 0x128   : > { %2412 = vmatpush1.bf16.msra.mxu0 %v4572_v58 }
 0x129   : > { %2413 = vmatprep.subr.bf16.mxu0 %v4577_v59 }
 0x12a   : > { %4218 = vmatpush1.bf16.msra.mxu1 %v5288_v29 }
 0x12b   : > { %4220 = vmatprep.subr.bf16.mxu1 %v5292_v31 }
 0x12c   : > { %2414 = vmatpush1.bf16.msra.mxu0 %v4575_v60 }
 0x12d   : > { %2415 = vmatprep.subr.bf16.mxu0 %v4580_v61 }
 0x12e   : > { %4222 = vmatpush1.bf16.msra.mxu1 %v5300_v36 }
 0x12f   : > { %4127 = vmatprep.subr.msk.mxu1 %vm2490_vm3, %v5305_v38 }
 0x130   : > { %2416 = vmatpush1.bf16.msra.mxu0 %v4578_v62 }
 0x131   : > { %2417 = vmatprep.subr.bf16.mxu0 %v4583_v1 }
 0x132   : > { %4128 = vmatpush1.msk.msra.mxu1 %vm2490_vm3, %v5312_v39 }
 0x133   : > { %4224 = vmatprep.subr.bf16.mxu1 %v5263_v13  ;;  %4129 = vmatmul.mubr.msk.f32.vlgmr.msra.gmra.mrb[10].mxu1 %vm2486_vm4, %v4126_v4 }
 0x134   : > { %2418 = vmatpush1.bf16.msra.mxu0 %v4581_v2  ;;  %4226 = vmatpush1.bf16.msra.mxu1 %v5274_v21 }
 0x135   : > { %2419 = vmatprep.subr.bf16.mxu0 %v4586_v5  ;;  %4228 = vmatprep.subr.bf16.mxu1 %v5278_v23 }
 0x136   : > { %2950 = vmatprep.mubr.f32.mxu1 %v4652_v34 }
 0x138   : > { %2420 = vmatpush1.bf16.msra.mxu0 %v4584_v6  ;;  %4230 = vmatpush1.bf16.msra.mxu1 %v5288_v29 }
 0x139   : > { %2430 = vmatprep.subr.bf16.mxu0 %v4589_v7  ;;  %4232 = vmatprep.subr.bf16.mxu1 %v5292_v31 }
 0x13b   : > { %2422 = vmatmul.mubr.bf16.vlgmr.msra.gmra.mrb[4].mxu0 %v5191_v16  ;;  %v4593_v16 = vld [vmem:[%s5109_s10 + $0x4c0] ss:$8 sps:$4 sm:$0xff]  }
 0x13c   : > { %2431 = vmatpush1.bf16.msra.mxu0 %v4587_v8  ;;  %4234 = vmatpush1.bf16.msra.mxu1 %v5300_v36 }
 0x13d   : > { %2432 = vmatprep.subr.bf16.mxu0 %v4592_v9  ;;  %4133 = vmatprep.subr.msk.mxu1 %vm2490_vm3, %v5305_v38  ;;  %v3879_v9 = vld [vmem:[%s5549_s24 + $0x4] sm:$0xf] }
 0x13e   : > { %4114 = vmatprep.mubr.msk.bf16.mxu0 %vm1477_vm0, %v5197_v19  ;;  %v4596_v19 = vld [vmem:[%s5109_s10 + $0x4d0] ss:$8 sps:$4 sm:$0xff]  }
 0x140   : > { %2433 = vmatpush1.bf16.msra.mxu0 %v4590_v11  ;;  %4134 = vmatpush1.msk.msra.mxu1 %vm2490_vm3, %v5312_v39 }
 0x141   : > { %4135 = vmatmul.mubr.msk.f32.vlgmr.msra.gmra.mrb[12].mxu1 %vm2486_vm4, %v4132_v12  ;;  %4236 = vmatprep.subr.bf16.mxu1 %v5263_v13 }
 0x142   : > { %4238 = vmatpush1.bf16.msra.mxu1 %v5274_v21  ;;  %2434 = vmatprep.subr.bf16.mxu0 %v4595_v15 }
 0x143   : > { %4240 = vmatprep.subr.bf16.mxu1 %v5278_v23  ;;  %3047 = vmatprep.mubr.f32.mxu1 %v4652_v34 }
 0x144   : > { %2435 = vmatpush1.bf16.msra.mxu0 %v4593_v16 }
 0x145   : > { %2436 = vmatprep.subr.bf16.mxu0 %v4598_v17 }
 0x146   : > { %4242 = vmatpush1.bf16.msra.mxu1 %v5288_v29 }
 0x147   : > { %4244 = vmatprep.subr.bf16.mxu1 %v5292_v31 }
 0x148   : > { %2437 = vmatpush1.bf16.msra.mxu0 %v4596_v19 }
 0x149   : > { %2438 = vmatprep.subr.bf16.mxu0 %v4601_v18 }
 0x14a   : > { %4246 = vmatpush1.bf16.msra.mxu1 %v5300_v36 }
 0x14b   : > { %4136 = vmatprep.subr.msk.mxu1 %vm2490_vm3, %v5305_v38 }
 0x14c   : > { %2439 = vmatpush1.bf16.msra.mxu0 %v4599_v63 }
 0x14d   : > { %2440 = vmatprep.subr.bf16.mxu0 %v4604_v20 }
 0x14e   : > { %4137 = vmatpush1.msk.msra.mxu1 %vm2490_vm3, %v5312_v39 }
 0x14f   : > { %4138 = vmatmul.mubr.msk.f32.vlgmr.msra.gmra.mrb[14].mxu1 %vm2486_vm4, %v4131_v24  ;;  %4248 = vmatprep.subr.bf16.mxu1 %v5263_v13 }
 0x150   : > { %2441 = vmatpush1.bf16.msra.mxu0 %v4602_v22  ;;  %4250 = vmatpush1.bf16.msra.mxu1 %v5274_v21 }
 0x151   : > { %2442 = vmatprep.subr.bf16.mxu0 %v4607_v25  ;;  %4252 = vmatprep.subr.bf16.mxu1 %v5278_v23 }
 0x152   : > { %3123 = vmatprep.mubr.f32.mxu1 %v4652_v34 }
 0x154   : > { %2443 = vmatpush1.bf16.msra.mxu0 %v4605_v26  ;;  %4254 = vmatpush1.bf16.msra.mxu1 %v5288_v29 }
 0x155   : > { %2444 = vmatprep.subr.bf16.mxu0 %v4610_v27  ;;  %4256 = vmatprep.subr.bf16.mxu1 %v5292_v31 }
 0x158   : > { %2445 = vmatpush1.bf16.msra.mxu0 %v4608_v28  ;;  %4258 = vmatpush1.bf16.msra.mxu1 %v5300_v36 }
 0x159   : > { %2446 = vmatprep.subr.bf16.mxu0 %v4613_v30  ;;  %4140 = vmatprep.subr.msk.mxu1 %vm2490_vm3, %v5305_v38 }
 0x15c   : > { %2447 = vmatpush1.bf16.msra.mxu0 %v4611_v32  ;;  %4141 = vmatpush1.msk.msra.mxu1 %vm2490_vm3, %v5312_v39 }
 0x15d   : > { %4142 = vmatmul.mubr.msk.f32.vlgmr.msra.gmra.mrb[16].mxu1 %vm2486_vm4, %v4139_v33  ;;  %4260 = vmatprep.subr.bf16.mxu1 %v5263_v13 }
 0x15e   : > { %4262 = vmatpush1.bf16.msra.mxu1 %v5274_v21  ;;  %2448 = vmatprep.subr.bf16.mxu0 %v4616_v35 }
 0x15f   : > { %4264 = vmatprep.subr.bf16.mxu1 %v5278_v23  ;;  %3224 = vmatprep.mubr.f32.mxu1 %v4652_v34 }
 0x160   : > { %2449 = vmatpush1.bf16.msra.mxu0 %v4614_v37 }
 0x161   : > { %2450 = vmatprep.subr.bf16.mxu0 %v4619_v14 }
 0x162   : > { %4266 = vmatpush1.bf16.msra.mxu1 %v5288_v29 }
 0x163   : > { %4268 = vmatprep.subr.bf16.mxu1 %v5292_v31 }
 0x164   : > { %2451 = vmatpush1.bf16.msra.mxu0 %v4617_v40 }
 0x165   : > { %2452 = vmatprep.subr.bf16.mxu0 %v4622_v41 }
 0x166   : > { %4270 = vmatpush1.bf16.msra.mxu1 %v5300_v36 }
 0x167   : > { %4144 = vmatprep.subr.msk.mxu1 %vm2490_vm3, %v5305_v38 }
 0x168   : > { %2453 = vmatpush1.bf16.msra.mxu0 %v4620_v43 }
 0x169   : > { %2454 = vmatprep.subr.bf16.mxu0 %v2387_v45 }
 0x16a   : > { %4145 = vmatpush1.msk.msra.mxu1 %vm2490_vm3, %v5312_v39 }
 0x16b   : > { %4272 = vmatprep.subr.bf16.mxu1 %v5263_v13  ;;  %4146 = vmatmul.mubr.msk.f32.vlgmr.msra.gmra.mrb[18].mxu1 %vm2486_vm4, %v4143_v47 }
 0x16c   : > { %2455 = vmatpush1.bf16.msra.mxu0 %v2384_v46  ;;  %4274 = vmatpush1.bf16.msra.mxu1 %v5274_v21 }
 0x16d   : > { %4276 = vmatprep.subr.bf16.mxu1 %v5278_v23  ;;  %4284 = vmatprep.subr.bf16.mxu0 %v5263_v13 }
 0x16e   : > { %3340 = vmatprep.mubr.f32.mxu1 %v4652_v34 }
 0x16f   : > { %2463 = vmatmul.mubr.bf16.vlgmr.msra.gmra.mrb[4].mxu0 %v5271_v10  ;;  %v4148_v10 = vld [vmem:[%s5613_s3 + $0x16] sm:$0x3] }
 0x170   : > { %4278 = vmatpush1.bf16.msra.mxu1 %v5288_v29  ;;  %4286 = vmatpush1.bf16.msra.mxu0 %v5274_v21 }
 0x171   : > { %4280 = vmatprep.subr.bf16.mxu1 %v5292_v31  ;;  %4288 = vmatprep.subr.bf16.mxu0 %v5278_v23 }
 0x172   : > { %3437 = vmatprep.mubr.f32.mxu0 %v4652_v34 }
 0x174   : > { %4282 = vmatpush1.bf16.msra.mxu1 %v5300_v36  ;;  %4290 = vmatpush1.bf16.msra.mxu0 %v5288_v29 }
 0x175   : > { %4150 = vmatprep.subr.msk.mxu1 %vm2490_vm3, %v5305_v38  ;;  %4292 = vmatprep.subr.bf16.mxu0 %v5292_v31 }
 0x178   : > { %4151 = vmatpush1.msk.msra.mxu1 %vm2490_vm3, %v5312_v39  ;;  %4294 = vmatpush1.bf16.msra.mxu0 %v5300_v36 }
 0x179   : > { %4152 = vmatmul.mubr.msk.f32.vlgmr.msra.gmra.mrb[20].mxu1 %vm2486_vm4, %v4149_v0  ;;  %4296 = vmatprep.subr.bf16.mxu1 %v5263_v13 }
 0x17a   : > { %4298 = vmatpush1.bf16.msra.mxu1 %v5274_v21  ;;  %4153 = vmatprep.subr.msk.mxu0 %vm2490_vm3, %v5305_v38 }
 0x17b   : > { %4300 = vmatprep.subr.bf16.mxu1 %v5278_v23  ;;  %3513 = vmatprep.mubr.f32.mxu1 %v4652_v34 }
 0x17c   : > { %4154 = vmatpush1.msk.msra.mxu0 %vm2490_vm3, %v5312_v39 }
 0x17d   : > { %4155 = vmatmul.mubr.msk.f32.vlgmr.msra.gmra.mrb[8].mxu0 %vm2486_vm4, %v4148_v10  ;;  %4308 = vmatprep.subr.bf16.mxu0 %v5263_v13  ;;  %v4156_v13 = vld [vmem:[%s5613_s3 + $0x12] sm:$0x3] }
 0x17e   : > { %4302 = vmatpush1.bf16.msra.mxu1 %v5288_v29  ;;  %4310 = vmatpush1.bf16.msra.mxu0 %v5274_v21  ;;  %v4160_v21 = vld [vmem:[%s5613_s3 + $0x14] sm:$0x3] }
 0x17f   : > { %4304 = vmatprep.subr.bf16.mxu1 %v5292_v31  ;;  %4312 = vmatprep.subr.bf16.mxu0 %v5278_v23  ;;  %v4653_v23 = vmov 1983009808  }
 0x180   : > { %3614 = vmatprep.mubr.f32.mxu0 %v4652_v34 }
 0x182   : > { %4306 = vmatpush1.bf16.msra.mxu1 %v5300_v36  ;;  %4314 = vmatpush1.bf16.msra.mxu0 %v5288_v29  ;;  %v1577_v29 = vunpack.c.l.s4 %v4653_v23 }
 0x183   : > { %4157 = vmatprep.subr.msk.mxu1 %vm2490_vm3, %v5305_v38  ;;  %4316 = vmatprep.subr.bf16.mxu0 %v5292_v31 }
 0x184   : > { %v1578_v31 = vunpack.c.0.s8 %v1577_v29 }
 0x186   : > { %4158 = vmatpush1.msk.msra.mxu1 %vm2490_vm3, %v5312_v39  ;;  %4318 = vmatpush1.bf16.msra.mxu0 %v5300_v36  ;;  %v5542_v34 = vsub.s32 %v1578_v31, %v5107_v3  ;;  %v1102_v3 = vld [vmem:[%s5549_s24] sm:$0xf] }
 0x187   : > { %4159 = vmatmul.mubr.msk.f32.vlgmr.msra.gmra.mrb[22].mxu1 %vm2486_vm4, %v4156_v13  ;;  %4161 = vmatprep.subr.msk.mxu0 %vm2490_vm3, %v5305_v38 }
 0x18a   : > { %4162 = vmatpush1.msk.msra.mxu0 %vm2490_vm3, %v5312_v39 }
 0x18b   : > { %4163 = vmatmul.mubr.msk.f32.vlgmr.msra.gmra.mrb[10].mxu0 %vm2486_vm4, %v4160_v21 }
 0x1ce   : > { %v1566_v36 = vpop.f32.mrb[0].mxu0  ;;  %v2015_v48 = vpop.f32.mrb[0].mxu1 }
 0x1cf   : > { %v1568_v38 = vpop.f32.mrb[1].mxu0  ;;  %v2017_v49 = vpop.f32.mrb[1].mxu1 }
 0x1d0   : > { %v1575_v50 = vcombine.low %v1566_v36, %v1568_v38  ;;  %v2024_v51 = vcombine.low %v2015_v48, %v2017_v49  ;;  %v1570_v52 = vpop.f32.mrb[2].mxu0  ;;  %v2019_v53 = vpop.f32.mrb[2].mxu1 }
 0x1d1   : > { %v1571_v54 = vpop.f32.mrb[3].mxu0  ;;  %v2020_v39 = vpop.f32.mrb[3].mxu1 }
 0x1d2   : > { %v1582_v55 = vrot.slane %v1575_v50, %v5542_v34  ;;  %v2031_v56 = vrot.slane %v2024_v51, %v5542_v34  ;;  %v3997_v51 = vld [vmem:[%s5549_s24 + $0x8] sm:$0xf] }
 0x1d4   : > { %v5552_v60 = vadd.f32 %v1582_v55, %v1102_v3  ;;  %v5558_v15 = vadd.f32 %v3879_v9, %v2031_v56 }
 0x1dc   : > { %v2563_v57 = vpop.f32.mrb[4].mxu1 }
 0x1dd   : > { %v2565_v58 = vpop.f32.mrb[5].mxu1 }
 0x1de   : > { %v2570_v59 = vcombine.low %v2563_v57, %v2565_v58 }
 0x1e0   : > { %v2577_v61 = vrot.slane %v2570_v59, %v5542_v34 }
 0x1e2   : > { %v2579_v62 = vmul.f32 %v2577_v61, %v5552_v60 }
 0x1e4   : > { %v2587_v1 = vrot.slane %v2579_v62, %v5542_v34 }
 0x1e6   : > { %v2588_v4 = vcombine.high %v2587_v1, %v2587_v1 }
 0x1ea   : > { %v2660_v2 = vpop.f32.mrb[6].mxu1 }
 0x1eb   : > { %v2661_v5 = vadd.f32 %v2660_v2, %v2587_v1  ;;  %v2662_v6 = vpop.f32.mrb[7].mxu1 }
 0x1ec   : > { %v2663_v7 = vadd.f32 %v2662_v6, %v2588_v4 }
 0x1f8   : > { %v2736_v8 = vpop.f32.mrb[8].mxu1 }
 0x1f9   : > { %v2738_v11 = vpop.f32.mrb[9].mxu1 }
 0x1fa   : > { %v2743_v12 = vcombine.low %v2736_v8, %v2738_v11 }
 0x1fc   : > { %v2750_v16 = vrot.slane %v2743_v12, %v5542_v34 }
 0x1fe   : > { %v2752_v17 = vmul.f32 %v2750_v16, %v5558_v15 }
 0x200   : > { %v2760_v19 = vrot.slane %v2752_v17, %v5542_v34 }
 0x202   : > { %v2761_v18 = vcombine.high %v2760_v19, %v2760_v19  ;;  %v2764_v63 = vadd.f32 %v2760_v19, %v2661_v5 }
 0x204   : > { %v2765_v20 = vadd.f32 %v2761_v18, %v2663_v7 }
 0x206   : > { %v2837_v22 = vpop.f32.mrb[10].mxu1 }
 0x207   : > { %v2839_v24 = vpop.f32.mrb[11].mxu1 }
 0x208   : > { %v2844_v25 = vcombine.low %v2837_v22, %v2839_v24 }
 0x20a   : > { %v2851_v26 = vrot.slane %v2844_v25, %v5542_v34 }
 0x214   : > { %v2952_v27 = vpop.f32.mrb[12].mxu1 }
 0x215   : > { %v2954_v28 = vpop.f32.mrb[13].mxu1 }
 0x216   : > { %v2959_v30 = vcombine.low %v2952_v27, %v2954_v28 }
 0x218   : > { %v2966_v32 = vrot.slane %v2959_v30, %v5542_v34 }
 0x21a   : > { %v2968_v33 = vmul.f32 %v2966_v32, %v5552_v60 }
 0x21c   : > { %v2976_v35 = vrot.slane %v2968_v33, %v5542_v34 }
 0x21e   : > { %v2977_v14 = vcombine.high %v2976_v35, %v2976_v35 }
 0x222   : > { %v3049_v37 = vpop.f32.mrb[14].mxu1 }
 0x223   : > { %v3050_v40 = vadd.f32 %v3049_v37, %v2976_v35  ;;  %v3051_v41 = vpop.f32.mrb[15].mxu1 }
 0x224   : > { %v3052_v42 = vadd.f32 %v3051_v41, %v2977_v14 }
 0x230   : > { %v3125_v43 = vpop.f32.mrb[16].mxu1 }
 0x231   : > { %v3127_v44 = vpop.f32.mrb[17].mxu1 }
 0x232   : > { %v3132_v45 = vcombine.low %v3125_v43, %v3127_v44 }
 0x234   : > { %v3139_v46 = vrot.slane %v3132_v45, %v5542_v34 }
 0x236   : > { %v3141_v47 = vmul.f32 %v3139_v46, %v5558_v15 }
 0x238   : > { %v3149_v0 = vrot.slane %v3141_v47, %v5542_v34 }
 0x23a   : > { %v3150_v10 = vcombine.high %v3149_v0, %v3149_v0  ;;  %v3153_v13 = vadd.f32 %v3149_v0, %v3050_v40 }
 0x23c   : > { %v3154_v21 = vadd.f32 %v3150_v10, %v3052_v42 }
 0x23e   : > { %v3226_v23 = vpop.f32.mrb[18].mxu1 }
 0x23f   : > { %v3228_v29 = vpop.f32.mrb[19].mxu1 }
 0x240   : > { %v3233_v31 = vcombine.low %v3226_v23, %v3228_v29 }
 0x242   : > { %v3240_v36 = vrot.slane %v3233_v31, %v5542_v34  ;;  %v2464_v48 = vpop.f32.mrb[4].mxu0 }
 0x243   : > { %v2466_v38 = vpop.f32.mrb[5].mxu0 }
 0x244   : > { %v2473_v49 = vcombine.low %v2464_v48, %v2466_v38  ;;  %v2468_v50 = vpop.f32.mrb[6].mxu0 }
 0x245   : > { %v2469_v52 = vpop.f32.mrb[7].mxu0 }
 0x246   : > { %v2480_v53 = vrot.slane %v2473_v49, %v5542_v34 }
 0x248   : > { %v2482_v54 = vadd.f32 %v3997_v51, %v2480_v53 }
 0x24a   : > { %v2853_v39 = vmul.f32 %v2851_v26, %v2482_v54  ;;  %v3242_v55 = vmul.f32 %v3240_v36, %v2482_v54 }
 0x24c   : > { %v2861_v56 = vrot.slane %v2853_v39, %v5542_v34  ;;  %v3250_v57 = vrot.slane %v3242_v55, %v5542_v34  ;;  %v3342_v3 = vpop.f32.mrb[20].mxu1 }
 0x24d   : > { %v3344_v58 = vpop.f32.mrb[21].mxu1 }
 0x24e   : > { %v2862_v59 = vcombine.high %v2861_v56, %v2861_v56  ;;  %v2865_v61 = vadd.f32 %v2861_v56, %v2764_v63  ;;  %v3251_v62 = vcombine.high %v3250_v57, %v3250_v57  ;;  %v3254_v1 = vadd.f32 %v3250_v57, %v3153_v13 }
 0x24f   : > { %v3349_v2 = vcombine.low %v3342_v3, %v3344_v58 }
 0x250   : > { %v2866_v4 = vadd.f32 %v2862_v59, %v2765_v20  ;;  %v3255_v5 = vadd.f32 %v3251_v62, %v3154_v21  ;;  %v3439_v6 = vpop.f32.mrb[8].mxu0 }
 0x251   : > { %v3356_v7 = vrot.slane %v3349_v2, %v5542_v34  ;;  %v3441_v8 = vpop.f32.mrb[9].mxu0 }
 0x252   : > { %v2869_v9 = vcombine.low %v2865_v61, %v2866_v4  ;;  %v3258_v11 = vcombine.low %v3254_v1, %v3255_v5 }
 0x253   : > { %v3358_v12 = vmul.f32 %v3356_v7, %v5552_v60 }
 0x254   : > { %4130 = vst.sshfl [vmem:[%s5579_s28] sm:$0x33 pattern:$0x76325410] %v2869_v9 }
 0x255   : > { %4172 = vst.sshfl [vmem:[%s5579_s28 + $0x4] sm:$0x33 pattern:$0x76325410] %v3258_v11  ;;  %v3366_v16 = vrot.slane %v3358_v12, %v5542_v34 }
 0x257   : > { %v3440_v17 = vadd.f32 %v3439_v6, %v3366_v16  ;;  %v3367_v19 = vcombine.high %v3366_v16, %v3366_v16 }
 0x259   : > { %v3442_v18 = vadd.f32 %v3441_v8, %v3367_v19 }
 0x25a   : > { %v3515_v63 = vpop.f32.mrb[22].mxu1 }
 0x25b   : > { %v3517_v20 = vpop.f32.mrb[23].mxu1 }
 0x25c   : > { %v3522_v22 = vcombine.low %v3515_v63, %v3517_v20  ;;  %v3686_v44 = vld [vmem:[%s5579_s28 + $0x4] sm:$0xf] (%p4718_p5) }
 0x25d   : > { %3687 = vst [vmem:[%s3668_s6 + $0x8] sm:$0xf] (%p4718_p5), %v3686_v44 }
 0x25e   : > { %v3529_v24 = vrot.slane %v3522_v22, %v5542_v34  ;;  %v3616_v25 = vpop.f32.mrb[10].mxu0 }
 0x25f   : > { %v3618_v60 = vpop.f32.mrb[11].mxu0 }
 0x260   : > { %v3531_v26 = vmul.f32 %v3529_v24, %v5558_v15  ;;  %v3623_v27 = vcombine.low %v3616_v25, %v3618_v60  ;;  %v3684_v15 = vld [vmem:[%s5579_s28] sm:$0xf] (%p4718_p5) }
 0x261   : > { %3685 = vst [vmem:[%s3668_s6] sm:$0xf] (%p4718_p5), %v3684_v15 }
 0x262   : > { %v3539_v28 = vrot.slane %v3531_v26, %v5542_v34  ;;  %v3630_v30 = vrot.slane %v3623_v27, %v5542_v34 }
 0x264   : > { %v3540_v32 = vcombine.high %v3539_v28, %v3539_v28  ;;  %v3543_v33 = vadd.f32 %v3539_v28, %v3440_v17  ;;  %v3632_v35 = vmul.f32 %v3630_v30, %v2482_v54 }
 0x266   : > { %v3544_v37 = vadd.f32 %v3540_v32, %v3442_v18  ;;  %v3640_v14 = vrot.slane %v3632_v35, %v5542_v34 }
 0x268   : > { %v3641_v40 = vcombine.high %v3640_v14, %v3640_v14  ;;  %v3644_v41 = vadd.f32 %v3640_v14, %v3543_v33  ;;  %3665 = sbr.rel (!%p4718_p5) target bundleno = 631 (0x277), region = 146 }
 0x26a   : > { %v3645_v42 = vadd.f32 %v3641_v40, %v3544_v37 }
 0x26c   : > { %v3648_v43 = vcombine.low %v3644_v41, %v3645_v42 }
 0x26e   : > { %4173 = vst.sshfl [vmem:[%s5579_s28 + $0x8] sm:$0x33 pattern:$0x76325410] %v3648_v43 }
 0x275   : > { %v3688_v34 = vld [vmem:[%s5579_s28 + $0x8] sm:$0xf] }
 0x276   : > { %3689 = vst [vmem:[%s3668_s6 + $0x10] sm:$0xf] %v3688_v34 }
 0x277 PF: > { %p12_p10 = scmp.ge.s32.totalorder %s4701_s22, 4   ;;  %s5618_s18 = smov %s4644_s19 }
 0x278   : > { %s5619_s19 = smov %s4712_s25  ;;  %s5620_s20 = smov %s4701_s22 }
 0x279   :  { %14 = sbr.rel (!%p12_p10) target bundleno = 2 (0x2), region = 251 }

</bundles_post_ra>
